<compile_context>
chip_gen: v6e
topology: v6e:2x2x1
jax: 0.10.0
libtpu: 0.0.40
codegen_flags: <defaults>
</compile_context>

<pallas_src>
import jax
import jax.numpy as jnp
from jax.experimental import pallas as pl
from jax.experimental.pallas import tpu as pltpu

D_IN = 512
D_HID = 1024
D_OUT = 512
TK = 512  # hidden-dim slab streamed per grid step (2 steps total)
N_K = D_HID // TK


def generator_kernel(x_ref, wfc_ref, bfc_ref, wmu_ref, bmu_ref, out_ref):
    k = pl.program_id(0)

    # Hidden slab: (B, TK) = ReLU(x @ W_fc[:, k*TK:(k+1)*TK] + b_fc_slab)
    x_bf = x_ref[...].astype(jnp.bfloat16)
    h = jnp.dot(x_bf, wfc_ref[...], preferred_element_type=jnp.float32)
    h = jnp.maximum(h + bfc_ref[pl.ds(k, 1), :], 0.0)

    # Output partial: (B, D_OUT) = h_k @ W_mu[k*TK:(k+1)*TK, :]
    z = jnp.dot(h.astype(jnp.bfloat16), wmu_ref[...],
                preferred_element_type=jnp.float32)

    # out_ref is f32 and resident across k -> accumulate into it directly.
    @pl.when(k == 0)
    def _():
        out_ref[...] = z

    @pl.when(k > 0)
    def _():
        out_ref[...] += z

    @pl.when(k == pl.num_programs(0) - 1)
    def _():
        acc = out_ref[...] + bmu_ref[...]
        out_ref[...] = jnp.where(acc >= 0.0, acc, 0.2 * acc)


def prepare_generator_params(w_fc, b_fc, w_mu, b_mu):
    """One-time parameter prep (call OUTSIDE the per-step forward).

    Casts weights to bf16 and reshapes b_fc into (N_K, TK) slabs so the kernel
    can keep it fully resident and slice it per grid step.
    """
    return (w_fc.astype(jnp.bfloat16),
            jnp.reshape(b_fc, (N_K, TK)).astype(jnp.float32),
            w_mu.astype(jnp.bfloat16),
            jnp.reshape(b_mu, (1, D_OUT)).astype(jnp.float32))


def generator_forward(x, w_fc_bf, b_fc_slabs, w_mu_bf, b_mu):
    """x: (B, 512) f32.  Weights already bf16 in (in, out) layout."""
    B = x.shape[0]

    cost = pl.CostEstimate(
        flops=2 * B * D_IN * D_HID + 2 * B * D_HID * D_OUT,
        transcendentals=0,
        bytes_accessed=(w_fc_bf.size + w_mu_bf.size) * 2          # bf16 weights
        + (x.size + b_fc_slabs.size + b_mu.size + B * D_OUT) * 4,  # f32 acts/bias
    )

    return pl.pallas_call(
        generator_kernel,
        out_shape=jax.ShapeDtypeStruct((B, D_OUT), jnp.float32),
        grid_spec=pltpu.PrefetchScalarGridSpec(
            num_scalar_prefetch=0,
            grid=(N_K,),
            in_specs=[
                pl.BlockSpec((B, D_IN), lambda k: (0, 0)),     # x (resident)
                pl.BlockSpec((D_IN, TK), lambda k: (0, k)),    # W_fc slab
                pl.BlockSpec((N_K, TK), lambda k: (0, 0)),     # b_fc (resident)
                pl.BlockSpec((TK, D_OUT), lambda k: (k, 0)),   # W_mu slab
                pl.BlockSpec((1, D_OUT), lambda k: (0, 0)),    # b_mu (resident)
            ],
            out_specs=pl.BlockSpec((B, D_OUT), lambda k: (0, 0)),
        ),
        compiler_params=pltpu.CompilerParams(
            dimension_semantics=("arbitrary",),
            vmem_limit_bytes=16 << 20,
        ),
        cost_estimate=cost,
    )(x, w_fc_bf, b_fc_slabs, w_mu_bf, b_mu)


generator_forward_jit = jax.jit(generator_forward)


def reference_forward(x, w_fc, b_fc, w_mu, b_mu):
    """Pure-JAX reference mirroring the kernel's bf16 weight storage."""
    xb = x.astype(jnp.bfloat16)
    wfb = w_fc.astype(jnp.bfloat16)
    wmb = w_mu.astype(jnp.bfloat16)
    h = jnp.dot(xb, wfb, preferred_element_type=jnp.float32) + b_fc
    h = jnp.maximum(h, 0.0)
    z = jnp.dot(h.astype(jnp.bfloat16), wmb,
                preferred_element_type=jnp.float32) + b_mu
    return jnp.where(z >= 0.0, z, 0.2 * z)


if __name__ == "__main__":
    key = jax.random.PRNGKey(0)
    k_x, k_wfc, k_bfc, k_wmu, k_bmu = jax.random.split(key, 5)

    B = 8  # small batch; feature dims (512 -> 1024 -> 512) fixed by the module

    x = jax.random.normal(k_x, (B, D_IN), dtype=jnp.float32)

    # PyTorch-style uniform init bounds, stored pre-transposed as (in, out).
    lim_fc = 1.0 / jnp.sqrt(jnp.float32(D_IN))
    w_fc = jax.random.uniform(k_wfc, (D_IN, D_HID), jnp.float32,
                              -lim_fc, lim_fc)
    b_fc = jax.random.uniform(k_bfc, (D_HID,), jnp.float32, -lim_fc, lim_fc)

    lim_mu = 1.0 / jnp.sqrt(jnp.float32(D_HID))
    w_mu = jax.random.uniform(k_wmu, (D_HID, D_OUT), jnp.float32,
                              -lim_mu, lim_mu)
    b_mu = jax.random.uniform(k_bmu, (D_OUT,), jnp.float32, -lim_mu, lim_mu)

    # One-time param prep (outside the hot forward path).
    params = prepare_generator_params(w_fc, b_fc, w_mu, b_mu)
    params = jax.block_until_ready(params)

    out = jax.block_until_ready(generator_forward_jit(x, *params))

    ref = reference_forward(x, w_fc, b_fc[None, :], w_mu, b_mu[None, :])
    assert out.shape == (B, D_OUT)
    assert jnp.allclose(out, ref, atol=1e-3, rtol=1e-3), (
        float(jnp.max(jnp.abs(out - ref))))

    print("KERNEL_OK")
</pallas_src>

<mosaic_0001>
module attributes {stable_mosaic.version = 11 : i64} {
  func.func @generator_kernel(%arg0: i32, %arg1: memref<8x512xf32, #tpu.memory_space<vmem>>, %arg2: memref<512x512xbf16, #tpu.memory_space<vmem>>, %arg3: memref<2x512xf32, #tpu.memory_space<vmem>>, %arg4: memref<512x512xbf16, #tpu.memory_space<vmem>>, %arg5: memref<1x512xf32, #tpu.memory_space<vmem>>, %arg6: memref<8x512xf32, #tpu.memory_space<vmem>>) attributes {dimension_semantics = [#tpu.dimension_semantics<arbitrary>], iteration_bounds = array<i64: 2>, scalar_prefetch = 0 : i64, scratch_operands = 0 : i64, tpu.core_type = #tpu.core_type<tc>, window_params = [{pipeline_mode = #tpu.pipeline_mode<synchronous>, transform_indices = @transform_0, window_bounds = array<i64: 8, 512>}, {transform_indices = @transform_1, window_bounds = array<i64: 512, 512>}, {pipeline_mode = #tpu.pipeline_mode<synchronous>, transform_indices = @transform_2, window_bounds = array<i64: 2, 512>}, {transform_indices = @transform_3, window_bounds = array<i64: 512, 512>}, {pipeline_mode = #tpu.pipeline_mode<synchronous>, transform_indices = @transform_4, window_bounds = array<i64: 1, 512>}, {pipeline_mode = #tpu.pipeline_mode<synchronous>, transform_indices = @transform_5, window_bounds = array<i64: 8, 512>}]} {
    %c0 = arith.constant 0 : index
    %c0_0 = arith.constant 0 : index
    %0 = vector.load %arg1[%c0, %c0_0] : memref<8x512xf32, #tpu.memory_space<vmem>>, vector<8x512xf32>
    %1 = arith.truncf %0 : vector<8x512xf32> to vector<8x512xbf16>
    %c0_1 = arith.constant 0 : index
    %c0_2 = arith.constant 0 : index
    %2 = vector.load %arg2[%c0_1, %c0_2] : memref<512x512xbf16, #tpu.memory_space<vmem>>, vector<512x512xbf16>
    %cst = arith.constant dense<0.000000e+00> : vector<8x512xf32>
    %3 = tpu.matmul %1, %2, %cst {dimension_numbers = #tpu.dot_dimension_numbers<[1], [0], [0], [1], [0, 0, 1, 1], [], []>} : vector<8x512xbf16>, vector<512x512xbf16>, vector<8x512xf32> -> vector<8x512xf32>
    %4 = arith.index_cast %arg0 : i32 to index
    %c0_3 = arith.constant 0 : index
    %5 = vector.load %arg3[%4, %c0_3] : memref<2x512xf32, #tpu.memory_space<vmem>>, vector<1x512xf32>
    %6 = vector.broadcast %5 : vector<1x512xf32> to vector<8x512xf32>
    %7 = arith.addf %3, %6 : vector<8x512xf32>
    %cst_4 = arith.constant 0.000000e+00 : f32
    %8 = vector.broadcast %cst_4 : f32 to vector<8x512xf32>
    %9 = arith.maximumf %7, %8 : vector<8x512xf32>
    %10 = arith.truncf %9 : vector<8x512xf32> to vector<8x512xbf16>
    %c0_5 = arith.constant 0 : index
    %c0_6 = arith.constant 0 : index
    %11 = vector.load %arg4[%c0_5, %c0_6] : memref<512x512xbf16, #tpu.memory_space<vmem>>, vector<512x512xbf16>
    %cst_7 = arith.constant dense<0.000000e+00> : vector<8x512xf32>
    %12 = tpu.matmul %10, %11, %cst_7 {dimension_numbers = #tpu.dot_dimension_numbers<[1], [0], [0], [1], [0, 0, 1, 1], [], []>} : vector<8x512xbf16>, vector<512x512xbf16>, vector<8x512xf32> -> vector<8x512xf32>
    %c0_i32 = arith.constant 0 : i32
    %13 = arith.cmpi eq, %arg0, %c0_i32 : i32
    %14 = arith.extui %13 : i1 to i32
    %c0_i32_8 = arith.constant 0 : i32
    %15 = arith.cmpi ne, %14, %c0_i32_8 : i32
    scf.if %15 {
      %c0_12 = arith.constant 0 : index
      %c0_13 = arith.constant 0 : index
      %22 = vector.load %arg6[%c0_12, %c0_13] : memref<8x512xf32, #tpu.memory_space<vmem>>, vector<8x512xf32>
      tpu.vector_store %arg6[%c0_12, %c0_13], %12 {strides = array<i32>} : memref<8x512xf32, #tpu.memory_space<vmem>>, vector<8x512xf32>,
    } else {
    }
    %c0_i32_9 = arith.constant 0 : i32
    %16 = arith.cmpi sgt, %arg0, %c0_i32_9 : i32
    %17 = arith.extui %16 : i1 to i32
    %c0_i32_10 = arith.constant 0 : i32
    %18 = arith.cmpi ne, %17, %c0_i32_10 : i32
    scf.if %18 {
      %c0_12 = arith.constant 0 : index
      %c0_13 = arith.constant 0 : index
      %22 = vector.load %arg6[%c0_12, %c0_13] : memref<8x512xf32, #tpu.memory_space<vmem>>, vector<8x512xf32>
      %23 = arith.addf %22, %12 : vector<8x512xf32>
      %c0_14 = arith.constant 0 : index
      %c0_15 = arith.constant 0 : index
      %24 = vector.load %arg6[%c0_14, %c0_15] : memref<8x512xf32, #tpu.memory_space<vmem>>, vector<8x512xf32>
      tpu.vector_store %arg6[%c0_14, %c0_15], %23 {strides = array<i32>} : memref<8x512xf32, #tpu.memory_space<vmem>>, vector<8x512xf32>,
    } else {
    }
    %c1_i32 = arith.constant 1 : i32
    %19 = arith.cmpi eq, %arg0, %c1_i32 : i32
    %20 = arith.extui %19 : i1 to i32
    %c0_i32_11 = arith.constant 0 : i32
    %21 = arith.cmpi ne, %20, %c0_i32_11 : i32
    scf.if %21 {
      %c0_12 = arith.constant 0 : index
      %c0_13 = arith.constant 0 : index
      %22 = vector.load %arg6[%c0_12, %c0_13] : memref<8x512xf32, #tpu.memory_space<vmem>>, vector<8x512xf32>
      %c0_14 = arith.constant 0 : index
      %c0_15 = arith.constant 0 : index
      %23 = vector.load %arg5[%c0_14, %c0_15] : memref<1x512xf32, #tpu.memory_space<vmem>>, vector<1x512xf32>
      %24 = vector.broadcast %23 : vector<1x512xf32> to vector<8x512xf32>
      %25 = arith.addf %22, %24 : vector<8x512xf32>
      %cst_16 = arith.constant 0.000000e+00 : f32
      %26 = vector.broadcast %cst_16 : f32 to vector<8x512xf32>
      %27 = arith.cmpf oge, %25, %26 : vector<8x512xf32>
      %cst_17 = arith.constant 2.000000e-01 : f32
      %28 = vector.broadcast %cst_17 : f32 to vector<8x512xf32>
      %29 = arith.mulf %28, %25 : vector<8x512xf32>
      %30 = arith.select %27, %25, %29 : vector<8x512xi1>, vector<8x512xf32>
      %c0_18 = arith.constant 0 : index
      %c0_19 = arith.constant 0 : index
      %31 = vector.load %arg6[%c0_18, %c0_19] : memref<8x512xf32, #tpu.memory_space<vmem>>, vector<8x512xf32>
      tpu.vector_store %arg6[%c0_18, %c0_19], %30 {strides = array<i32>} : memref<8x512xf32, #tpu.memory_space<vmem>>, vector<8x512xf32>,
    } else {
    }
    return
  }
  func.func @transform_0(%arg0: i32) -> (i32, i32) {
    %c0_i32 = arith.constant 0 : i32
    %c0_i32_0 = arith.constant 0 : i32
    %c0_i32_1 = arith.constant 0 : i32
    return %c0_i32, %c0_i32_0 : i32, i32
  }
  func.func @transform_1(%arg0: i32) -> (i32, i32) {
    %c0_i32 = arith.constant 0 : i32
    %c0_i32_0 = arith.constant 0 : i32
    return %c0_i32, %arg0 : i32, i32
  }
  func.func @transform_2(%arg0: i32) -> (i32, i32) {
    %c0_i32 = arith.constant 0 : i32
    %c0_i32_0 = arith.constant 0 : i32
    %c0_i32_1 = arith.constant 0 : i32
    return %c0_i32, %c0_i32_0 : i32, i32
  }
  func.func @transform_3(%arg0: i32) -> (i32, i32) {
    %c0_i32 = arith.constant 0 : i32
    %c0_i32_0 = arith.constant 0 : i32
    return %arg0, %c0_i32 : i32, i32
  }
  func.func @transform_4(%arg0: i32) -> (i32, i32) {
    %c0_i32 = arith.constant 0 : i32
    %c0_i32_0 = arith.constant 0 : i32
    %c0_i32_1 = arith.constant 0 : i32
    return %c0_i32, %c0_i32_0 : i32, i32
  }
  func.func @transform_5(%arg0: i32) -> (i32, i32) {
    %c0_i32 = arith.constant 0 : i32
    %c0_i32_0 = arith.constant 0 : i32
    %c0_i32_1 = arith.constant 0 : i32
    return %c0_i32, %c0_i32_0 : i32, i32
  }
}

</mosaic_0001>

<bundles_post_ra>
// kernel: generator_forward.1
= control target key start
LH: loop header
LB: loop body
LE: loop exit
PB: predicated region body
PF: predicated region fallthrough
CT: control target
= control target key end

     0   :  { %10 = vsyncpa [#allocation3], 0  ;;  %s3884_s0 = inlined_call_operand.hbm [shape: f32[8,512], index: 0, kind: input, shape index: {}]   ;;  %s3885_s1 = inlined_call_operand.hbm [shape: bf16[512,1024], index: 1, kind: input, shape index: {}]   ;;  %s3886_s2 = inlined_call_operand.hbm [shape: f32[2,512], index: 2, kind: input, shape index: {}]   ;;  %s3887_s3 = inlined_call_operand.hbm [shape: bf16[1024,512], index: 3, kind: input, shape index: {}]   ;;  %s3888_s4 = inlined_call_operand.vmem [shape: f32[1,512], index: 4, kind: input, shape index: {}]   ;;  %s3889_s5 = inlined_call_operand.hbm [shape: f32[8,512], index: 5, kind: output, shape index: {}]  }
   0x1   :  { %11 = vsyncpa [#allocation6], 0 }
   0x2   :  { %13 = vsyncpa [#allocation6 + $0x1], 0 }
   0x3   :  { %14 = vsyncpa [#allocation9], 0 }
   0x4   :  { %16 = vsyncpa [#allocation9 + $0x1], 0 }
   0x5   :  { %17 = vsyncpa [#allocation4], 0  ;;  %s3354_s18 = smov 0   ;;  %s3356_s19 = smov 0  }
   0x6   :  { %s3358_s20 = smov 0   ;;  %s3360_s21 = smov 0  }
   0x7 LB: > { %s3373_s22 = sadd.s32 4294967295, %s3314_s21   ;;  %s3376_s23 = sadd.s32 1, %s3314_s21   ;;  %s3314_s21 = sphi %s3360_s21, %s3910_s21   ;;  %s3310_s20 = sphi %s3358_s20, %s3909_s20   ;;  %s3306_s19 = sphi %s3356_s19, %s3908_s19   ;;  %s3302_s18 = sphi %s3354_s18, %s3907_s18  }
   0x8   : > { %s48_s24 = ssub.s32 %s3314_s21, %s3376_s23  ;;  %s51_s25 = sadd.s32 1, %s3310_s20 }
   0x9   : > { %p49_p0 = scmp.eq.s32.totalorder %s48_s24, 0  ;;  %p58_p1 = scmp.ne.s32.totalorder %s3310_s20, %s3306_s19 }
   0xa   : > { %p59_p2 = scmp.eq.s32.totalorder %s3314_s21, 0  ;;  %p64_p3 = scmp.ne.s32.totalorder %s3306_s19, %s3302_s18 }
   0xb   : > { %s3386_s26 = scalar_select %p49_p0, %s3310_s20, %s51_s25  }
   0xc   : > { %p3388_p4 = por %p59_p2, %p58_p1  ;;  %p3890_p5 = scmp.eq.s32.totalorder %s3373_s22, 0 }
   0xd   : > { %p2388_p6 = scmp.ge.s32.totalorder %s3314_s21, 1  ;;  %p164_p7 = scmp.lt.s32.totalorder %s3314_s21, 3 }
   0xe   : > { %p3397_p8 = por %p3890_p5, %p64_p3  ;;  %s3316_s30 = smov [#allocation7]  }
   0xf   : > { %p3402_p10 = pnand %p2388_p6, %p164_p7  ;;  %s188_s6 = sshll.u32 %s3316_s30, 4  ;;  %s189_s6 = int_to_ptr.vmem [resolvable:$true] %s188_s6 }
  0x10   : > { %s3895_s28 = scalar_select %p3397_p8, 1, 0 }
  0x11   : > { %s3896_s29 = scalar_select %p3402_p10, 1, 0 }
  0x12   : > { %p2689_p11 = pneg %p3402_p10  ;;  %p2705_p12 = scmp.lt.s32.totalorder %s3314_s21, 2 }
  0x13   : > { %s3317_s8 = smov [#allocation2]   ;;  %s202_s11 = sand.u32 1, %s3314_s21  }
  0x14   : > { %p3411_p13 = pnand %p2689_p11, %p3890_p5  ;;  %s177_s9 = sshll.u32 %s3317_s8, 4  ;;  %s178_s9 = int_to_ptr.vmem [resolvable:$true] %s177_s9 }
  0x15   : > { %p3417_p0 = pnand %p2705_p12, %p3388_p4  ;;  %s3143_s12 = scalar_lea.vmem %s189_s6, 128 }
  0x16   : > { %p3134_p1 = pneg %p3411_p13  ;;  %p3144_p2 = scmp.ne.s32.totalorder %s189_s6, %s3143_s12 }
  0x17   : > { %s3898_s10 = scalar_select %p3417_p0, 1, 0 }
  0x18   : > { %p3146_p3 = pnand %p3144_p2, %p3134_p1  ;;  %p3151_p7 = scmp.lt.s32.totalorder %s189_s6, %s189_s6 }
  0x19   : > { %p3152_p11 = scmp.lt.s32.totalorder %s3143_s12, %s3143_s12 }
  0x1a   : > { %p3147_p6 = pneg %p3146_p3 }
  0x1b   : > { %p3153_p9 = por %p3152_p11, %p3151_p7 }
  0x1d   : > { %p3154_p5 = pnand %p3153_p9, %p3147_p6 }
  0x1f   : > { %3157 = shalt.err (!%p3154_p5)
}
  0x20   : > { %2695 = dma.hbm_to_vmem [thread:$0]  (!%p3411_p13), %s3886_s2, 128, %s189_s6, [#allocation6]  }
  0x21   : > { %s3169_s15 = scalar_lea.vmem %s178_s9, 512  ;;  %p3177_p2 = scmp.lt.s32.totalorder %s178_s9, %s178_s9 }
  0x22   : > { %p3170_p4 = scmp.ne.s32.totalorder %s178_s9, %s3169_s15  ;;  %p3178_p3 = scmp.lt.s32.totalorder %s3169_s15, %s3169_s15 }
  0x24   : > { %p3172_p12 = pnand %p3170_p4, %p3134_p1  ;;  %p3179_p10 = por %p3178_p3, %p3177_p2 }
  0x26   : > { %p3173_p8 = pneg %p3172_p12 }
  0x28   : > { %p3180_p0 = pnand %p3179_p10, %p3173_p8 }
  0x2a   : > { %3183 = shalt.err (!%p3180_p0)
}
  0x2b   : > { %2692 = dma.hbm_to_vmem [thread:$0]  (!%p3411_p13), %s3884_s0, 512, %s178_s9, [#allocation3]  }
  0x2c   : > { %s204_s18 = sand.u32 1, %s3310_s20   ;;  %s2669_s24 = sshll.u32 %s3314_s21, 8 }
  0x2d   : > { %s3444_s25 = sshll.u32 %s204_s18, 10  ;;  %s3449_s6 = scalar_lea.hbm %s3885_s1, %s2669_s24 }
  0x2e   : > { %s206_s7 = scalar_lea.vmem [#allocation5], %s3444_s25  ;;  %s3454_s12 = scalar_lea.sflag [#allocation6], %s202_s11 }
  0x2f   : > { %s213_s8 = sshll.u32 %s206_s7, 4  ;;  %s3184_s9 = scalar_lea.hbm %s3449_s6, 16384  ;;  %s3452_s8 = int_to_ptr.vmem [resolvable:$true] %s213_s8 }
  0x30   : > { %p3185_p5 = scmp.ne.s32.totalorder %s3449_s6, %s3184_s9  ;;  %p3899_p8 = scmp.ne.s32.totalorder %s3898_s10, 0 }
  0x31   : > { %s3189_s15 = scalar_lea.hbm %s3885_s1, 32768  ;;  %p3190_p0 = scmp.lt.s32.totalorder %s3449_s6, %s3885_s1 }
  0x32   : > { %p3186_p9 = pneg %p3899_p8  ;;  %p3191_p1 = scmp.lt.s32.totalorder %s3189_s15, %s3184_s9 }
  0x34   : > { %p3187_p10 = pnand %p3186_p9, %p3185_p5  ;;  %p3192_p6 = por %p3191_p1, %p3190_p0 }
  0x36   : > { %p3188_p13 = pneg %p3187_p10 }
  0x38   : > { %p3193_p7 = pnand %p3192_p6, %p3188_p13 }
  0x3a   : > { %3196 = shalt.err (!%p3193_p7)
}
  0x3b   : > { %s3197_s11 = scalar_lea.vmem %s3452_s8, 16384  ;;  %s3318_s24 = smov [#allocation5]  }
  0x3c   : > { %p3198_p11 = scmp.ne.s32.totalorder %s3452_s8, %s3197_s11  ;;  %s3202_s27 = sshll.u32 %s3318_s24, 4  ;;  %s3203_s27 = int_to_ptr.vmem [resolvable:$false] %s3202_s27 }
  0x3d   : > { %s3204_s30 = scalar_lea.vmem %s3203_s27, 32768  ;;  %p3205_p2 = scmp.lt.s32.totalorder %s3452_s8, %s3203_s27 }
  0x3e   : > { %p3200_p4 = pnand %p3198_p11, %p3186_p9  ;;  %p3206_p3 = scmp.lt.s32.totalorder %s3204_s30, %s3197_s11 }
  0x40   : > { %p3201_p12 = pneg %p3200_p4  ;;  %p3207_p5 = por %p3206_p3, %p3205_p2 }
  0x42   : > { %p3208_p10 = pnand %p3207_p5, %p3201_p12 }
  0x44   : > { %3211 = shalt.err (!%p3208_p10)
}
  0x45   : > { %s3319_s7 = smov 512   ;;  %s3320_s9 = smov 256  }
  0x46   : > { %s3321_s13 = smov 16   ;;  %s2671_s14 = sshll.u32 %s3314_s21, 14 }
  0x47   : > { %2699 = dma.hbm_to_vmem [thread:$0]  (!%p3899_p8), %s3449_s6, 16384, %s3452_s8, %s3454_s12, %s3319_s7, %s3320_s9, %s3321_s13  }
  0x48   : > { %s227_s15 = scalar_lea.vmem [#allocation8], %s3444_s25  ;;  %s3488_s24 = scalar_lea.hbm %s3887_s3, %s2671_s14 }
  0x49   : > { %s235_s16 = sshll.u32 %s227_s15, 4  ;;  %s224_s27 = scalar_lea.sflag [#allocation9], %s204_s18  ;;  %s3490_s16 = int_to_ptr.vmem [resolvable:$true] %s235_s16 }
  0x4a   : > { %s3212_s30 = scalar_lea.hbm %s3488_s24, 16384  ;;  %s3217_s6 = scalar_lea.hbm %s3887_s3, 32768 }
  0x4b   : > { %p3213_p13 = scmp.ne.s32.totalorder %s3488_s24, %s3212_s30  ;;  %p3218_p6 = scmp.lt.s32.totalorder %s3488_s24, %s3887_s3 }
  0x4c   : > { %p3219_p7 = scmp.lt.s32.totalorder %s3217_s6, %s3212_s30 }
  0x4d   : > { %p3215_p0 = pnand %p3213_p13, %p3186_p9 }
  0x4e   : > { %p3220_p11 = por %p3219_p7, %p3218_p6 }
  0x4f   : > { %p3216_p1 = pneg %p3215_p0 }
  0x51   : > { %p3221_p4 = pnand %p3220_p11, %p3216_p1 }
  0x53   : > { %3224 = shalt.err (!%p3221_p4)
}
  0x54   : > { %s3225_s18 = scalar_lea.vmem %s3490_s16, 16384  ;;  %s3322_s7 = smov [#allocation8]  }
  0x55   : > { %p3226_p12 = scmp.ne.s32.totalorder %s3490_s16, %s3225_s18  ;;  %s3230_s14 = sshll.u32 %s3322_s7, 4  ;;  %s3231_s14 = int_to_ptr.vmem [resolvable:$false] %s3230_s14 }
  0x56   : > { %s3232_s15 = scalar_lea.vmem %s3231_s14, 32768  ;;  %p3233_p5 = scmp.lt.s32.totalorder %s3490_s16, %s3231_s14 }
  0x57   : > { %p3228_p2 = pnand %p3226_p12, %p3186_p9  ;;  %p3234_p10 = scmp.lt.s32.totalorder %s3232_s15, %s3225_s18 }
  0x59   : > { %p3229_p3 = pneg %p3228_p2  ;;  %p3235_p13 = por %p3234_p10, %p3233_p5 }
  0x5b   : > { %p3236_p0 = pnand %p3235_p13, %p3229_p3 }
  0x5d   : > { %3239 = shalt.err (!%p3236_p0)
}
  0x5e   : > { %2702 = dma.hbm_to_vmem [thread:$0]  (!%p3899_p8), %s3488_s24, 16384, %s3490_s16, %s224_s27, %s3320_s9, %s3320_s9, %s3321_s13  }
  0x5f   : > { %p3900_p9 = scmp.ne.s32.totalorder %s3896_s29, 0 }
  0x60   : > { %p3901_p1 = scmp.eq.s32.totalorder (!%p3900_p9), %s3373_s22, 0 }
  0x61   : > { %247 = sbr.rel (%p3900_p9) target bundleno = 755 (0x2f3), region = 40 }
  0x66   : > { %3281 = dma.done.wait (%p3901_p1), [#allocation3], 512   ;;  %p3902_p6 = pmov %p3901_p1 }
  0x67   : > { %s253_s10 = sand.u32 1, %s3373_s22   ;;  %s255_s17 = sand.u32 1, %s3306_s19  }
  0x68   : > { %3283 = vsyncadd (%p3902_p6), [#allocation3], 4294966784  ;;  %s2401_s11 = sshll.u32 %s255_s17, 10  ;;  %s254_s30 = scalar_lea.sflag [#allocation6], %s253_s10 }
  0x69   : > { %s3529_s21 = scalar_lea.vmem [#allocation5], %s2401_s11  ;;  %p3903_p8 = scmp.ne.s32.totalorder %s3895_s28, 0 }
  0x6b   : > { %3285 = dma.done.wait (%p3903_p8), %s254_s30, 16384  }
  0x6c   : > { %3287 = vsyncadd (%p3903_p8), %s254_s30, 4294950912  ;;  %p3904_p7 = pmov %p3901_p1 }
  0x6d   : > { %p3905_p11 = pmov %p3901_p1 }
  0x6e   : > { %3289 = dma.done.wait (%p3904_p7), [#allocation6], 128  }
  0x6f   : > { %3291 = vsyncadd (%p3905_p11), [#allocation6], 4294967168  ;;  %s267_s29 = scalar_lea.sflag [#allocation9], %s255_s17  ;;  %s3539_s9 = scalar_lea.vmem [#allocation8], %s2401_s11 }
  0x70   : > { %3293 = dma.done.wait (%p3903_p8), %s267_s29, 16384  }
  0x71   : > { %3295 = vsyncadd (%p3903_p8), %s267_s29, 4294950912  ;;  %v2748_v0 = vld [vmem:[%s3529_s21 + $0xe4] ss:$16 sps:$4 sm:$0xff]   ;;  %v2752_v2 = vld [vmem:[%s3529_s21 + $0xe0] ss:$16 sps:$4 sm:$0xff]   ;;  %s435_s28 = sshra.s32 %s3373_s22, 1 }
  0x72   : > { %v2750_v1 = vld [vmem:[%s3529_s21 + $0x2e4] ss:$16 sps:$4 sm:$0xff]   ;;  %1105 = vmatprep.subr.bf16.mxu0 %v2748_v0  ;;  %v2753_v3 = vld [vmem:[%s3529_s21 + $0x2e0] ss:$16 sps:$4 sm:$0xff]   ;;  %v300_v46 = vld [vmem:[#allocation2 + $0x8] sm:$0xff]  ;;  %s2672_s13 = sshll.u32 %s435_s28, 3 }
  0x73   : > { %1146 = vmatprep.subr.bf16.mxu1 %v2750_v1  ;;  %v2754_v4 = vld [vmem:[%s3529_s21 + $0xc4] ss:$16 sps:$4 sm:$0xff]   ;;  %1106 = vmatpush1.bf16.msra.mxu0 %v2752_v2  ;;  %v2758_v6 = vld [vmem:[%s3529_s21 + $0xc0] ss:$16 sps:$4 sm:$0xff]   ;;  %v3593_v49 = vpack.c.bf16 %v300_v46, %v300_v46  ;;  %v302_v50 = vld [vmem:[#allocation2 + $0x18] sm:$0xff]  ;;  %s441_s16 = sadd.s32 %s2672_s13, %s253_s10  ;;  %p3906_p4 = scmp.ne.s32.totalorder %s3373_s22, 0 }
  0x74   : > { %1147 = vmatpush1.bf16.msra.mxu1 %v2753_v3  ;;  %v2756_v5 = vld [vmem:[%s3529_s21 + $0x2c4] ss:$16 sps:$4 sm:$0xff]   ;;  %1107 = vmatprep.subr.bf16.mxu0 %v2754_v4  ;;  %v2759_v7 = vld [vmem:[%s3529_s21 + $0x2c0] ss:$16 sps:$4 sm:$0xff]   ;;  %v306_v52 = vpack.c.bf16 %v302_v50, %v302_v50  ;;  %v2898_v46 = vld [vmem:[%s3529_s21 + $0x1c8] ss:$16 sps:$4 sm:$0xff]  }
  0x75   : > { %1148 = vmatprep.subr.bf16.mxu1 %v2756_v5  ;;  %v2760_v8 = vld [vmem:[%s3529_s21 + $0xa4] ss:$16 sps:$4 sm:$0xff]   ;;  %v2764_v10 = vld [vmem:[%s3529_s21 + $0xa0] ss:$16 sps:$4 sm:$0xff]   ;;  %1137 = vmatprep.mubr.bf16.mxu0 %v3593_v49  ;;  %v2904_v50 = vld [vmem:[%s3529_s21 + $0x1a8] ss:$16 sps:$4 sm:$0xff]  }
  0x76   : > { %v2762_v9 = vld [vmem:[%s3529_s21 + $0x2a4] ss:$16 sps:$4 sm:$0xff]   ;;  %v2765_v11 = vld [vmem:[%s3529_s21 + $0x2a0] ss:$16 sps:$4 sm:$0xff]   ;;  %1178 = vmatprep.mubr.bf16.mxu1 %v306_v52  ;;  %s442_s24 = scalar_lea.vmem [#allocation7], %s441_s16 }
  0x77   : > { %1108 = vmatpush1.bf16.msra.mxu0 %v2758_v6  ;;  %v2766_v12 = vld [vmem:[%s3529_s21 + $0x84] ss:$16 sps:$4 sm:$0xff]   ;;  %v2770_v14 = vld [vmem:[%s3529_s21 + $0x80] ss:$16 sps:$4 sm:$0xff]   ;;  %v2846_v6 = vld [vmem:[%s3529_s21 + $0xec] ss:$16 sps:$4 sm:$0xff]  }
  0x78   : > { %1149 = vmatpush1.bf16.msra.mxu1 %v2759_v7  ;;  %1109 = vmatprep.subr.bf16.mxu0 %v2760_v8  ;;  %v2768_v13 = vld [vmem:[%s3529_s21 + $0x284] ss:$16 sps:$4 sm:$0xff]   ;;  %v2771_v15 = vld [vmem:[%s3529_s21 + $0x280] ss:$16 sps:$4 sm:$0xff]   ;;  %v2849_v7 = vld [vmem:[%s3529_s21 + $0x2ec] ss:$16 sps:$4 sm:$0xff]  }
  0x79   : > { %1150 = vmatprep.subr.bf16.mxu1 %v2762_v9  ;;  %v2772_v16 = vld [vmem:[%s3529_s21 + $0x64] ss:$16 sps:$4 sm:$0xff]   ;;  %v2776_v18 = vld [vmem:[%s3529_s21 + $0x60] ss:$16 sps:$4 sm:$0xff]  }
  0x7a   : > { %v2774_v17 = vld [vmem:[%s3529_s21 + $0x264] ss:$16 sps:$4 sm:$0xff]   ;;  %v2777_v19 = vld [vmem:[%s3529_s21 + $0x260] ss:$16 sps:$4 sm:$0xff]  }
  0x7b   : > { %1110 = vmatpush1.bf16.msra.mxu0 %v2764_v10  ;;  %v2778_v20 = vld [vmem:[%s3529_s21 + $0x44] ss:$16 sps:$4 sm:$0xff]   ;;  %v2782_v22 = vld [vmem:[%s3529_s21 + $0x40] ss:$16 sps:$4 sm:$0xff]   ;;  %v2844_v10 = vld [vmem:[%s3529_s21 + $0xe8] ss:$16 sps:$4 sm:$0xff]  }
  0x7c   : > { %1151 = vmatpush1.bf16.msra.mxu1 %v2765_v11  ;;  %1111 = vmatprep.subr.bf16.mxu0 %v2766_v12  ;;  %v2780_v21 = vld [vmem:[%s3529_s21 + $0x244] ss:$16 sps:$4 sm:$0xff]   ;;  %v2783_v23 = vld [vmem:[%s3529_s21 + $0x240] ss:$16 sps:$4 sm:$0xff]   ;;  %v2847_v11 = vld [vmem:[%s3529_s21 + $0x2e8] ss:$16 sps:$4 sm:$0xff]  }
  0x7d   : > { %1152 = vmatprep.subr.bf16.mxu1 %v2768_v13  ;;  %v2784_v24 = vld [vmem:[%s3529_s21 + $0x24] ss:$16 sps:$4 sm:$0xff]   ;;  %v2788_v26 = vld [vmem:[%s3529_s21 + $0x20] ss:$16 sps:$4 sm:$0xff]   ;;  %v2852_v12 = vld [vmem:[%s3529_s21 + $0xcc] ss:$16 sps:$4 sm:$0xff]  }
  0x7e   : > { %v2786_v25 = vld [vmem:[%s3529_s21 + $0x224] ss:$16 sps:$4 sm:$0xff]   ;;  %v2789_v27 = vld [vmem:[%s3529_s21 + $0x220] ss:$16 sps:$4 sm:$0xff]   ;;  %v2855_v13 = vld [vmem:[%s3529_s21 + $0x2cc] ss:$16 sps:$4 sm:$0xff]  }
  0x7f   : > { %1112 = vmatpush1.bf16.msra.mxu0 %v2770_v14  ;;  %v2790_v28 = vld [vmem:[%s3529_s21 + $0x4] ss:$16 sps:$4 sm:$0xff]   ;;  %v2794_v30 = vld [vmem:[%s3529_s21] ss:$16 sps:$4 sm:$0xff]   ;;  %v2850_v14 = vld [vmem:[%s3529_s21 + $0xc8] ss:$16 sps:$4 sm:$0xff]  }
  0x80   : > { %1153 = vmatpush1.bf16.msra.mxu1 %v2771_v15  ;;  %1113 = vmatprep.subr.bf16.mxu0 %v2772_v16  ;;  %v2792_v29 = vld [vmem:[%s3529_s21 + $0x204] ss:$16 sps:$4 sm:$0xff]   ;;  %v2795_v31 = vld [vmem:[%s3529_s21 + $0x200] ss:$16 sps:$4 sm:$0xff]   ;;  %v2853_v15 = vld [vmem:[%s3529_s21 + $0x2c8] ss:$16 sps:$4 sm:$0xff]  }
  0x81   : > { %1154 = vmatprep.subr.bf16.mxu1 %v2774_v17  ;;  %v2796_v32 = vld [vmem:[%s3529_s21 + $0x1e4] ss:$16 sps:$4 sm:$0xff]   ;;  %v2800_v34 = vld [vmem:[%s3529_s21 + $0x1e0] ss:$16 sps:$4 sm:$0xff]   ;;  %v2858_v16 = vld [vmem:[%s3529_s21 + $0xac] ss:$16 sps:$4 sm:$0xff]  }
  0x82   : > { %v2798_v33 = vld [vmem:[%s3529_s21 + $0x3e4] ss:$16 sps:$4 sm:$0xff]   ;;  %v2801_v35 = vld [vmem:[%s3529_s21 + $0x3e0] ss:$16 sps:$4 sm:$0xff]   ;;  %v2861_v17 = vld [vmem:[%s3529_s21 + $0x2ac] ss:$16 sps:$4 sm:$0xff]  }
  0x83   : > { %1114 = vmatpush1.bf16.msra.mxu0 %v2776_v18  ;;  %v2802_v36 = vld [vmem:[%s3529_s21 + $0x1c4] ss:$16 sps:$4 sm:$0xff]   ;;  %v2806_v38 = vld [vmem:[%s3529_s21 + $0x1c0] ss:$16 sps:$4 sm:$0xff]   ;;  %v2856_v18 = vld [vmem:[%s3529_s21 + $0xa8] ss:$16 sps:$4 sm:$0xff]  }
  0x84   : > { %1155 = vmatpush1.bf16.msra.mxu1 %v2777_v19  ;;  %1115 = vmatprep.subr.bf16.mxu0 %v2778_v20  ;;  %v2804_v37 = vld [vmem:[%s3529_s21 + $0x3c4] ss:$16 sps:$4 sm:$0xff]   ;;  %v2807_v39 = vld [vmem:[%s3529_s21 + $0x3c0] ss:$16 sps:$4 sm:$0xff]   ;;  %v2859_v19 = vld [vmem:[%s3529_s21 + $0x2a8] ss:$16 sps:$4 sm:$0xff]  }
  0x85   : > { %1156 = vmatprep.subr.bf16.mxu1 %v2780_v21  ;;  %v2808_v40 = vld [vmem:[%s3529_s21 + $0x1a4] ss:$16 sps:$4 sm:$0xff]   ;;  %v2812_v42 = vld [vmem:[%s3529_s21 + $0x1a0] ss:$16 sps:$4 sm:$0xff]   ;;  %v2864_v20 = vld [vmem:[%s3529_s21 + $0x8c] ss:$16 sps:$4 sm:$0xff]  }
  0x86   : > { %v2810_v41 = vld [vmem:[%s3529_s21 + $0x3a4] ss:$16 sps:$4 sm:$0xff]   ;;  %v2813_v43 = vld [vmem:[%s3529_s21 + $0x3a0] ss:$16 sps:$4 sm:$0xff]   ;;  %v2867_v21 = vld [vmem:[%s3529_s21 + $0x28c] ss:$16 sps:$4 sm:$0xff]  }
  0x87   : > { %1116 = vmatpush1.bf16.msra.mxu0 %v2782_v22  ;;  %v2814_v44 = vld [vmem:[%s3529_s21 + $0x184] ss:$16 sps:$4 sm:$0xff]   ;;  %v2818_v47 = vld [vmem:[%s3529_s21 + $0x180] ss:$16 sps:$4 sm:$0xff]   ;;  %v2862_v22 = vld [vmem:[%s3529_s21 + $0x88] ss:$16 sps:$4 sm:$0xff]  }
  0x88   : > { %1157 = vmatpush1.bf16.msra.mxu1 %v2783_v23  ;;  %1117 = vmatprep.subr.bf16.mxu0 %v2784_v24  ;;  %v2816_v45 = vld [vmem:[%s3529_s21 + $0x384] ss:$16 sps:$4 sm:$0xff]   ;;  %v2819_v48 = vld [vmem:[%s3529_s21 + $0x380] ss:$16 sps:$4 sm:$0xff]   ;;  %v2865_v23 = vld [vmem:[%s3529_s21 + $0x288] ss:$16 sps:$4 sm:$0xff]  }
  0x89   : > { %1158 = vmatprep.subr.bf16.mxu1 %v2786_v25  ;;  %v2820_v51 = vld [vmem:[%s3529_s21 + $0x164] ss:$16 sps:$4 sm:$0xff]   ;;  %v2824_v54 = vld [vmem:[%s3529_s21 + $0x160] ss:$16 sps:$4 sm:$0xff]   ;;  %v2870_v24 = vld [vmem:[%s3529_s21 + $0x6c] ss:$16 sps:$4 sm:$0xff]  }
  0x8a   : > { %v2822_v53 = vld [vmem:[%s3529_s21 + $0x364] ss:$16 sps:$4 sm:$0xff]   ;;  %v2825_v55 = vld [vmem:[%s3529_s21 + $0x360] ss:$16 sps:$4 sm:$0xff]   ;;  %v2873_v25 = vld [vmem:[%s3529_s21 + $0x26c] ss:$16 sps:$4 sm:$0xff]  }
  0x8b   : > { %1118 = vmatpush1.bf16.msra.mxu0 %v2788_v26  ;;  %v2826_v56 = vld [vmem:[%s3529_s21 + $0x144] ss:$16 sps:$4 sm:$0xff]   ;;  %v2830_v58 = vld [vmem:[%s3529_s21 + $0x140] ss:$16 sps:$4 sm:$0xff]   ;;  %v2868_v26 = vld [vmem:[%s3529_s21 + $0x68] ss:$16 sps:$4 sm:$0xff]  }
  0x8c   : > { %1159 = vmatpush1.bf16.msra.mxu1 %v2789_v27  ;;  %1119 = vmatprep.subr.bf16.mxu0 %v2790_v28  ;;  %v2828_v57 = vld [vmem:[%s3529_s21 + $0x344] ss:$16 sps:$4 sm:$0xff]   ;;  %v2831_v59 = vld [vmem:[%s3529_s21 + $0x340] ss:$16 sps:$4 sm:$0xff]   ;;  %v2871_v27 = vld [vmem:[%s3529_s21 + $0x268] ss:$16 sps:$4 sm:$0xff]  }
  0x8d   : > { %1160 = vmatprep.subr.bf16.mxu1 %v2792_v29  ;;  %v2832_v60 = vld [vmem:[%s3529_s21 + $0x124] ss:$16 sps:$4 sm:$0xff]   ;;  %v2836_v62 = vld [vmem:[%s3529_s21 + $0x120] ss:$16 sps:$4 sm:$0xff]   ;;  %v2876_v28 = vld [vmem:[%s3529_s21 + $0x4c] ss:$16 sps:$4 sm:$0xff]  }
  0x8e   : > { %v2834_v61 = vld [vmem:[%s3529_s21 + $0x324] ss:$16 sps:$4 sm:$0xff]   ;;  %v2837_v63 = vld [vmem:[%s3529_s21 + $0x320] ss:$16 sps:$4 sm:$0xff]   ;;  %v2879_v29 = vld [vmem:[%s3529_s21 + $0x24c] ss:$16 sps:$4 sm:$0xff]  }
  0x8f   : > { %1120 = vmatpush1.bf16.msra.mxu0 %v2794_v30  ;;  %v2838_v0 = vld [vmem:[%s3529_s21 + $0x104] ss:$16 sps:$4 sm:$0xff]   ;;  %v2842_v2 = vld [vmem:[%s3529_s21 + $0x100] ss:$16 sps:$4 sm:$0xff]   ;;  %v2874_v30 = vld [vmem:[%s3529_s21 + $0x48] ss:$16 sps:$4 sm:$0xff]  }
  0x90   : > { %1161 = vmatpush1.bf16.msra.mxu1 %v2795_v31  ;;  %1121 = vmatprep.subr.bf16.mxu0 %v2796_v32  ;;  %v2840_v1 = vld [vmem:[%s3529_s21 + $0x304] ss:$16 sps:$4 sm:$0xff]   ;;  %v2843_v3 = vld [vmem:[%s3529_s21 + $0x300] ss:$16 sps:$4 sm:$0xff]   ;;  %v2877_v31 = vld [vmem:[%s3529_s21 + $0x248] ss:$16 sps:$4 sm:$0xff]  }
  0x91   : > { %1162 = vmatprep.subr.bf16.mxu1 %v2798_v33  ;;  %v299_v4 = vld [vmem:[#allocation2] sm:$0xff]  ;;  %v301_v5 = vld [vmem:[#allocation2 + $0x10] sm:$0xff]  ;;  %v2882_v32 = vld [vmem:[%s3529_s21 + $0x2c] ss:$16 sps:$4 sm:$0xff]  }
  0x92   : > { %v3614_v8 = vpack.c.bf16 %v299_v4, %v299_v4  ;;  %v3616_v9 = vpack.c.bf16 %v301_v5, %v301_v5  ;;  %v2885_v33 = vld [vmem:[%s3529_s21 + $0x22c] ss:$16 sps:$4 sm:$0xff]  }
  0x93   : > { %1122 = vmatpush2.bf16.msra.mxu0 %v2800_v34  ;;  %v2880_v34 = vld [vmem:[%s3529_s21 + $0x28] ss:$16 sps:$4 sm:$0xff]   ;;  %v2936_v4 = vld [vmem:[%s3529_s21 + $0x10c] ss:$16 sps:$4 sm:$0xff]  }
  0x94   : > { %1163 = vmatpush2.bf16.msra.mxu1 %v2801_v35  ;;  %1123 = vmatprep.subr.bf16.mxu0 %v2802_v36  ;;  %v2883_v35 = vld [vmem:[%s3529_s21 + $0x228] ss:$16 sps:$4 sm:$0xff]   ;;  %v2888_v36 = vld [vmem:[%s3529_s21 + $0xc] ss:$16 sps:$4 sm:$0xff]  }
  0x95   : > { %1164 = vmatprep.subr.bf16.mxu1 %v2804_v37  ;;  %v2891_v37 = vld [vmem:[%s3529_s21 + $0x20c] ss:$16 sps:$4 sm:$0xff]  }
  0x96   : > { %v2939_v5 = vld [vmem:[%s3529_s21 + $0x30c] ss:$16 sps:$4 sm:$0xff]  }
  0x97   : > { %1124 = vmatpush2.bf16.msra.mxu0 %v2806_v38  ;;  %v2886_v38 = vld [vmem:[%s3529_s21 + $0x8] ss:$16 sps:$4 sm:$0xff]  }
  0x98   : > { %1165 = vmatpush2.bf16.msra.mxu1 %v2807_v39  ;;  %1125 = vmatprep.subr.bf16.mxu0 %v2808_v40  ;;  %v2889_v39 = vld [vmem:[%s3529_s21 + $0x208] ss:$16 sps:$4 sm:$0xff]   ;;  %v2894_v40 = vld [vmem:[%s3529_s21 + $0x1ec] ss:$16 sps:$4 sm:$0xff]  }
  0x99   : > { %1166 = vmatprep.subr.bf16.mxu1 %v2810_v41  ;;  %v2897_v41 = vld [vmem:[%s3529_s21 + $0x3ec] ss:$16 sps:$4 sm:$0xff]  }
  0x9b   : > { %1126 = vmatpush2.bf16.msra.mxu0 %v2812_v42  ;;  %v2892_v42 = vld [vmem:[%s3529_s21 + $0x1e8] ss:$16 sps:$4 sm:$0xff]  }
  0x9c   : > { %1167 = vmatpush2.bf16.msra.mxu1 %v2813_v43  ;;  %1127 = vmatprep.subr.bf16.mxu0 %v2814_v44  ;;  %v2895_v43 = vld [vmem:[%s3529_s21 + $0x3e8] ss:$16 sps:$4 sm:$0xff]   ;;  %v2900_v44 = vld [vmem:[%s3529_s21 + $0x1cc] ss:$16 sps:$4 sm:$0xff]  }
  0x9d   : > { %1168 = vmatprep.subr.bf16.mxu1 %v2816_v45  ;;  %v2903_v45 = vld [vmem:[%s3529_s21 + $0x3cc] ss:$16 sps:$4 sm:$0xff]  }
  0x9f   : > { %1128 = vmatpush2.bf16.msra.mxu0 %v2818_v47  ;;  %v2901_v47 = vld [vmem:[%s3529_s21 + $0x3c8] ss:$16 sps:$4 sm:$0xff]  }
  0xa0   : > { %1169 = vmatpush2.bf16.msra.mxu1 %v2819_v48  ;;  %1129 = vmatprep.subr.bf16.mxu0 %v2820_v51  ;;  %v2906_v48 = vld [vmem:[%s3529_s21 + $0x1ac] ss:$16 sps:$4 sm:$0xff]   ;;  %v2907_v51 = vld [vmem:[%s3529_s21 + $0x3a8] ss:$16 sps:$4 sm:$0xff]  }
  0xa1   : > { %1170 = vmatprep.subr.bf16.mxu1 %v2822_v53  ;;  %v2915_v53 = vld [vmem:[%s3529_s21 + $0x38c] ss:$16 sps:$4 sm:$0xff]  }
  0xa3   : > { %1130 = vmatpush2.bf16.msra.mxu0 %v2824_v54  ;;  %v2910_v54 = vld [vmem:[%s3529_s21 + $0x188] ss:$16 sps:$4 sm:$0xff]  }
  0xa4   : > { %1171 = vmatpush2.bf16.msra.mxu1 %v2825_v55  ;;  %1131 = vmatprep.subr.bf16.mxu0 %v2826_v56  ;;  %v2913_v55 = vld [vmem:[%s3529_s21 + $0x388] ss:$16 sps:$4 sm:$0xff]   ;;  %v2918_v56 = vld [vmem:[%s3529_s21 + $0x16c] ss:$16 sps:$4 sm:$0xff]  }
  0xa5   : > { %1172 = vmatprep.subr.bf16.mxu1 %v2828_v57  ;;  %v2921_v57 = vld [vmem:[%s3529_s21 + $0x36c] ss:$16 sps:$4 sm:$0xff]  }
  0xa7   : > { %1132 = vmatpush2.bf16.msra.mxu0 %v2830_v58  ;;  %v2916_v58 = vld [vmem:[%s3529_s21 + $0x168] ss:$16 sps:$4 sm:$0xff]  }
  0xa8   : > { %1173 = vmatpush2.bf16.msra.mxu1 %v2831_v59  ;;  %1133 = vmatprep.subr.bf16.mxu0 %v2832_v60  ;;  %v2919_v59 = vld [vmem:[%s3529_s21 + $0x368] ss:$16 sps:$4 sm:$0xff]   ;;  %v2924_v60 = vld [vmem:[%s3529_s21 + $0x14c] ss:$16 sps:$4 sm:$0xff]  }
  0xa9   : > { %1174 = vmatprep.subr.bf16.mxu1 %v2834_v61  ;;  %v2927_v61 = vld [vmem:[%s3529_s21 + $0x34c] ss:$16 sps:$4 sm:$0xff]  }
  0xab   : > { %1134 = vmatpush2.bf16.msra.mxu0 %v2836_v62  ;;  %v2922_v62 = vld [vmem:[%s3529_s21 + $0x148] ss:$16 sps:$4 sm:$0xff]  }
  0xac   : > { %1175 = vmatpush2.bf16.msra.mxu1 %v2837_v63  ;;  %1135 = vmatprep.subr.bf16.mxu0 %v2838_v0  ;;  %v2925_v63 = vld [vmem:[%s3529_s21 + $0x348] ss:$16 sps:$4 sm:$0xff]   ;;  %v2930_v0 = vld [vmem:[%s3529_s21 + $0x12c] ss:$16 sps:$4 sm:$0xff]  }
  0xad   : > { %1176 = vmatprep.subr.bf16.mxu1 %v2840_v1  ;;  %v2933_v1 = vld [vmem:[%s3529_s21 + $0x32c] ss:$16 sps:$4 sm:$0xff]  }
  0xaf   : > { %1136 = vmatpush2.bf16.msra.mxu0 %v2842_v2  ;;  %v2928_v2 = vld [vmem:[%s3529_s21 + $0x128] ss:$16 sps:$4 sm:$0xff]  }
  0xb0   : > { %1177 = vmatpush2.bf16.msra.mxu1 %v2843_v3  ;;  %1187 = vmatprep.subr.bf16.mxu0 %v2846_v6  ;;  %v2931_v3 = vld [vmem:[%s3529_s21 + $0x328] ss:$16 sps:$4 sm:$0xff]  }
  0xb1   : > { %1228 = vmatprep.subr.bf16.mxu1 %v2849_v7  ;;  %v2934_v6 = vld [vmem:[%s3529_s21 + $0x108] ss:$16 sps:$4 sm:$0xff]  }
  0xb2   : > { %1138 = vmatmul.mubr.bf16.vlgmr.msra.gmra.mxu0 %v3614_v8  ;;  %v2937_v7 = vld [vmem:[%s3529_s21 + $0x308] ss:$16 sps:$4 sm:$0xff]  }
  0xb3   : > { %1179 = vmatmul.mubr.bf16.vlgmr.msra.gmra.mxu1 %v3616_v9  ;;  %1188 = vmatpush1.bf16.msra.mxu0 %v2844_v10  ;;  %v2942_v10 = vld [vmem:[%s3539_s9 + $0xe4] ss:$16 sps:$4 sm:$0xff]  }
  0xb4   : > { %1229 = vmatpush1.bf16.msra.mxu1 %v2847_v11  ;;  %1189 = vmatprep.subr.bf16.mxu0 %v2852_v12  ;;  %v2940_v11 = vld [vmem:[%s3539_s9 + $0xe0] ss:$16 sps:$4 sm:$0xff]   ;;  %v2945_v12 = vld [vmem:[%s3539_s9 + $0xc4] ss:$16 sps:$4 sm:$0xff]  }
  0xb5   : > { %1230 = vmatprep.subr.bf16.mxu1 %v2855_v13  ;;  %1219 = vmatprep.mubr.bf16.mxu0 %v3593_v49  ;;  %v2909_v49 = vld [vmem:[%s3529_s21 + $0x3ac] ss:$16 sps:$4 sm:$0xff]   ;;  %v2943_v13 = vld [vmem:[%s3539_s9 + $0xc0] ss:$16 sps:$4 sm:$0xff]  }
  0xb6   : > { %1260 = vmatprep.mubr.bf16.mxu1 %v306_v52  ;;  %v2912_v52 = vld [vmem:[%s3529_s21 + $0x18c] ss:$16 sps:$4 sm:$0xff]  }
  0xb7   : > { %1190 = vmatpush1.bf16.msra.mxu0 %v2850_v14  ;;  %v2948_v14 = vld [vmem:[%s3539_s9 + $0xa4] ss:$16 sps:$4 sm:$0xff]  }
  0xb8   : > { %1231 = vmatpush1.bf16.msra.mxu1 %v2853_v15  ;;  %1191 = vmatprep.subr.bf16.mxu0 %v2858_v16  ;;  %v2946_v15 = vld [vmem:[%s3539_s9 + $0xa0] ss:$16 sps:$4 sm:$0xff]   ;;  %v2951_v16 = vld [vmem:[%s3539_s9 + $0x84] ss:$16 sps:$4 sm:$0xff]  }
  0xb9   : > { %1232 = vmatprep.subr.bf16.mxu1 %v2861_v17  ;;  %v2949_v17 = vld [vmem:[%s3539_s9 + $0x80] ss:$16 sps:$4 sm:$0xff]  }
  0xbb   : > { %1192 = vmatpush1.bf16.msra.mxu0 %v2856_v18  ;;  %v2990_v18 = vld [vmem:[%s3539_s9 + $0x2e4] ss:$16 sps:$4 sm:$0xff]  }
  0xbc   : > { %1233 = vmatpush1.bf16.msra.mxu1 %v2859_v19  ;;  %1193 = vmatprep.subr.bf16.mxu0 %v2864_v20  ;;  %v2952_v19 = vld [vmem:[%s3539_s9 + $0x60] ss:$16 sps:$4 sm:$0xff]  }
  0xbd   : > { %1234 = vmatprep.subr.bf16.mxu1 %v2867_v21  ;;  %v2994_v20 = vld [vmem:[%s3539_s9 + $0x2c0] ss:$16 sps:$4 sm:$0xff]   ;;  %v2996_v21 = vld [vmem:[%s3539_s9 + $0x2c4] ss:$16 sps:$4 sm:$0xff]  }
  0xbf   : > { %1194 = vmatpush1.bf16.msra.mxu0 %v2862_v22  ;;  %v2957_v22 = vld [vmem:[%s3539_s9 + $0x44] ss:$16 sps:$4 sm:$0xff]  }
  0xc0   : > { %1235 = vmatpush1.bf16.msra.mxu1 %v2865_v23  ;;  %1195 = vmatprep.subr.bf16.mxu0 %v2870_v24  ;;  %v2955_v23 = vld [vmem:[%s3539_s9 + $0x40] ss:$16 sps:$4 sm:$0xff]  }
  0xc1   : > { %1236 = vmatprep.subr.bf16.mxu1 %v2873_v25  ;;  %v3000_v24 = vld [vmem:[%s3539_s9 + $0x2a0] ss:$16 sps:$4 sm:$0xff]   ;;  %v3002_v25 = vld [vmem:[%s3539_s9 + $0x2a4] ss:$16 sps:$4 sm:$0xff]  }
  0xc3   : > { %1196 = vmatpush1.bf16.msra.mxu0 %v2868_v26  ;;  %v2960_v26 = vld [vmem:[%s3539_s9 + $0x24] ss:$16 sps:$4 sm:$0xff]  }
  0xc4   : > { %1237 = vmatpush1.bf16.msra.mxu1 %v2871_v27  ;;  %1197 = vmatprep.subr.bf16.mxu0 %v2876_v28  ;;  %v2958_v27 = vld [vmem:[%s3539_s9 + $0x20] ss:$16 sps:$4 sm:$0xff]  }
  0xc5   : > { %1238 = vmatprep.subr.bf16.mxu1 %v2879_v29  ;;  %v3006_v28 = vld [vmem:[%s3539_s9 + $0x280] ss:$16 sps:$4 sm:$0xff]   ;;  %v3008_v29 = vld [vmem:[%s3539_s9 + $0x284] ss:$16 sps:$4 sm:$0xff]  }
  0xc7   : > { %1198 = vmatpush1.bf16.msra.mxu0 %v2874_v30  ;;  %v2963_v30 = vld [vmem:[%s3539_s9 + $0x4] ss:$16 sps:$4 sm:$0xff]  }
  0xc8   : > { %1239 = vmatpush1.bf16.msra.mxu1 %v2877_v31  ;;  %1199 = vmatprep.subr.bf16.mxu0 %v2882_v32  ;;  %v2961_v31 = vld [vmem:[%s3539_s9] ss:$16 sps:$4 sm:$0xff]  }
  0xc9   : > { %1240 = vmatprep.subr.bf16.mxu1 %v2885_v33  ;;  %v3012_v32 = vld [vmem:[%s3539_s9 + $0x260] ss:$16 sps:$4 sm:$0xff]   ;;  %v3014_v33 = vld [vmem:[%s3539_s9 + $0x264] ss:$16 sps:$4 sm:$0xff]  }
  0xcb   : > { %1200 = vmatpush1.bf16.msra.mxu0 %v2880_v34  ;;  %v2966_v34 = vld [vmem:[%s3539_s9 + $0x1e4] ss:$16 sps:$4 sm:$0xff]  }
  0xcc   : > { %1241 = vmatpush1.bf16.msra.mxu1 %v2883_v35  ;;  %1201 = vmatprep.subr.bf16.mxu0 %v2888_v36  ;;  %v2964_v35 = vld [vmem:[%s3539_s9 + $0x1e0] ss:$16 sps:$4 sm:$0xff]  }
  0xcd   : > { %1242 = vmatprep.subr.bf16.mxu1 %v2891_v37  ;;  %v3018_v36 = vld [vmem:[%s3539_s9 + $0x240] ss:$16 sps:$4 sm:$0xff]   ;;  %v3020_v37 = vld [vmem:[%s3539_s9 + $0x244] ss:$16 sps:$4 sm:$0xff]  }
  0xcf   : > { %1202 = vmatpush1.bf16.msra.mxu0 %v2886_v38  ;;  %v2969_v38 = vld [vmem:[%s3539_s9 + $0x1c4] ss:$16 sps:$4 sm:$0xff]  }
  0xd0   : > { %1243 = vmatpush1.bf16.msra.mxu1 %v2889_v39  ;;  %1203 = vmatprep.subr.bf16.mxu0 %v2894_v40  ;;  %v2967_v39 = vld [vmem:[%s3539_s9 + $0x1c0] ss:$16 sps:$4 sm:$0xff]  }
  0xd1   : > { %1244 = vmatprep.subr.bf16.mxu1 %v2897_v41  ;;  %v3024_v40 = vld [vmem:[%s3539_s9 + $0x220] ss:$16 sps:$4 sm:$0xff]   ;;  %v3026_v41 = vld [vmem:[%s3539_s9 + $0x224] ss:$16 sps:$4 sm:$0xff]  }
  0xd3   : > { %1204 = vmatpush2.bf16.msra.mxu0 %v2892_v42  ;;  %v2972_v42 = vld [vmem:[%s3539_s9 + $0x1a4] ss:$16 sps:$4 sm:$0xff]  }
  0xd4   : > { %1245 = vmatpush2.bf16.msra.mxu1 %v2895_v43  ;;  %1205 = vmatprep.subr.bf16.mxu0 %v2900_v44  ;;  %v2970_v43 = vld [vmem:[%s3539_s9 + $0x1a0] ss:$16 sps:$4 sm:$0xff]  }
  0xd5   : > { %1246 = vmatprep.subr.bf16.mxu1 %v2903_v45  ;;  %v3030_v44 = vld [vmem:[%s3539_s9 + $0x200] ss:$16 sps:$4 sm:$0xff]   ;;  %v3032_v45 = vld [vmem:[%s3539_s9 + $0x204] ss:$16 sps:$4 sm:$0xff]  }
  0xd7   : > { %1206 = vmatpush2.bf16.msra.mxu0 %v2898_v46  ;;  %v2975_v46 = vld [vmem:[%s3539_s9 + $0x184] ss:$16 sps:$4 sm:$0xff]  }
  0xd8   : > { %1247 = vmatpush2.bf16.msra.mxu1 %v2901_v47  ;;  %1207 = vmatprep.subr.bf16.mxu0 %v2906_v48  ;;  %v2973_v47 = vld [vmem:[%s3539_s9 + $0x180] ss:$16 sps:$4 sm:$0xff]  }
  0xd9   : > { %1248 = vmatprep.subr.bf16.mxu1 %v2909_v49  ;;  %v3036_v48 = vld [vmem:[%s3539_s9 + $0x3e0] ss:$16 sps:$4 sm:$0xff]   ;;  %v3038_v49 = vld [vmem:[%s3539_s9 + $0x3e4] ss:$16 sps:$4 sm:$0xff]  }
  0xdb   : > { %1208 = vmatpush2.bf16.msra.mxu0 %v2904_v50  ;;  %v2978_v50 = vld [vmem:[%s3539_s9 + $0x164] ss:$16 sps:$4 sm:$0xff]  }
  0xdc   : > { %1249 = vmatpush2.bf16.msra.mxu1 %v2907_v51  ;;  %1209 = vmatprep.subr.bf16.mxu0 %v2912_v52  ;;  %v2976_v51 = vld [vmem:[%s3539_s9 + $0x160] ss:$16 sps:$4 sm:$0xff]  }
  0xdd   : > { %1250 = vmatprep.subr.bf16.mxu1 %v2915_v53  ;;  %v3042_v52 = vld [vmem:[%s3539_s9 + $0x3c0] ss:$16 sps:$4 sm:$0xff]   ;;  %v3044_v53 = vld [vmem:[%s3539_s9 + $0x3c4] ss:$16 sps:$4 sm:$0xff]  }
  0xdf   : > { %1210 = vmatpush2.bf16.msra.mxu0 %v2910_v54  ;;  %v2981_v54 = vld [vmem:[%s3539_s9 + $0x144] ss:$16 sps:$4 sm:$0xff]  }
  0xe0   : > { %1251 = vmatpush2.bf16.msra.mxu1 %v2913_v55  ;;  %1211 = vmatprep.subr.bf16.mxu0 %v2918_v56  ;;  %v2979_v55 = vld [vmem:[%s3539_s9 + $0x140] ss:$16 sps:$4 sm:$0xff]  }
  0xe1   : > { %1252 = vmatprep.subr.bf16.mxu1 %v2921_v57  ;;  %v3048_v56 = vld [vmem:[%s3539_s9 + $0x3a0] ss:$16 sps:$4 sm:$0xff]   ;;  %v3050_v57 = vld [vmem:[%s3539_s9 + $0x3a4] ss:$16 sps:$4 sm:$0xff]  }
  0xe3   : > { %1212 = vmatpush2.bf16.msra.mxu0 %v2916_v58  ;;  %v2984_v58 = vld [vmem:[%s3539_s9 + $0x124] ss:$16 sps:$4 sm:$0xff]  }
  0xe4   : > { %1253 = vmatpush2.bf16.msra.mxu1 %v2919_v59  ;;  %1213 = vmatprep.subr.bf16.mxu0 %v2924_v60  ;;  %v2982_v59 = vld [vmem:[%s3539_s9 + $0x120] ss:$16 sps:$4 sm:$0xff]  }
  0xe5   : > { %1254 = vmatprep.subr.bf16.mxu1 %v2927_v61  ;;  %v3054_v60 = vld [vmem:[%s3539_s9 + $0x380] ss:$16 sps:$4 sm:$0xff]   ;;  %v3056_v61 = vld [vmem:[%s3539_s9 + $0x384] ss:$16 sps:$4 sm:$0xff]  }
  0xe7   : > { %1214 = vmatpush2.bf16.msra.mxu0 %v2922_v62  ;;  %v2987_v62 = vld [vmem:[%s3539_s9 + $0x104] ss:$16 sps:$4 sm:$0xff]  }
  0xe8   : > { %1255 = vmatpush2.bf16.msra.mxu1 %v2925_v63  ;;  %1215 = vmatprep.subr.bf16.mxu0 %v2930_v0  ;;  %v2985_v63 = vld [vmem:[%s3539_s9 + $0x100] ss:$16 sps:$4 sm:$0xff]  }
  0xe9   : > { %1256 = vmatprep.subr.bf16.mxu1 %v2933_v1  ;;  %v3060_v0 = vld [vmem:[%s3539_s9 + $0x360] ss:$16 sps:$4 sm:$0xff]   ;;  %v3062_v1 = vld [vmem:[%s3539_s9 + $0x364] ss:$16 sps:$4 sm:$0xff]  }
  0xeb   : > { %1216 = vmatpush2.bf16.msra.mxu0 %v2928_v2  ;;  %v2993_v2 = vld [vmem:[%s3539_s9 + $0xec] ss:$16 sps:$4 sm:$0xff]  }
  0xec   : > { %1257 = vmatpush2.bf16.msra.mxu1 %v2931_v3  ;;  %1217 = vmatprep.subr.bf16.mxu0 %v2936_v4  ;;  %v3066_v3 = vld [vmem:[%s3539_s9 + $0x340] ss:$16 sps:$4 sm:$0xff]   ;;  %v3068_v4 = vld [vmem:[%s3539_s9 + $0x344] ss:$16 sps:$4 sm:$0xff]  }
  0xed   : > { %1258 = vmatprep.subr.bf16.mxu1 %v2939_v5  ;;  %v3074_v5 = vld [vmem:[%s3539_s9 + $0x324] ss:$16 sps:$4 sm:$0xff]  }
  0xef   : > { %1218 = vmatpush2.bf16.msra.mxu0 %v2934_v6  ;;  %v3072_v6 = vld [vmem:[%s3539_s9 + $0x320] ss:$16 sps:$4 sm:$0xff]  }
  0xf0   : > { %1259 = vmatpush2.bf16.msra.mxu1 %v2937_v7  ;;  %2045 = vmatprep.subr.bf16.mxu0 %v2942_v10  ;;  %v3080_v7 = vld [vmem:[%s3539_s9 + $0x304] ss:$16 sps:$4 sm:$0xff]   ;;  %v3078_v10 = vld [vmem:[%s3539_s9 + $0x300] ss:$16 sps:$4 sm:$0xff]  }
  0xf1   : > { %2086 = vmatprep.subr.bf16.mxu1 %v2990_v18 }
  0xf2   : > { %1220 = vmatmul.mubr.bf16.vlgmr.msra.gmra.mxu0 %v3614_v8  ;;  %v2954_v8 = vld [vmem:[%s3539_s9 + $0x64] ss:$16 sps:$4 sm:$0xff]  }
  0xf3   : > { %1261 = vmatmul.mubr.bf16.vlgmr.msra.gmra.mxu1 %v3616_v9  ;;  %2046 = vmatpush1.bf16.msra.mxu0 %v2940_v11  ;;  %v2988_v9 = vld [vmem:[%s3539_s9 + $0x2e0] ss:$16 sps:$4 sm:$0xff]   ;;  %v3086_v11 = vld [vmem:[%s3539_s9 + $0x2ec] ss:$16 sps:$4 sm:$0xff]  }
  0xf4   : > { %2047 = vmatprep.subr.bf16.mxu0 %v2945_v12  ;;  %2087 = vmatpush1.bf16.msra.mxu1 %v2988_v9  ;;  %v445_v12 = vlaneseq }
  0xf5   : > { %2088 = vmatprep.subr.bf16.mxu1 %v2996_v21 }
  0xf7   : > { %2048 = vmatpush1.bf16.msra.mxu0 %v2943_v13  ;;  %v3754_v13 = vshrl.u32 %v445_v12, 7 }
  0xf8   : > { %2049 = vmatprep.subr.bf16.mxu0 %v2948_v14  ;;  %2089 = vmatpush1.bf16.msra.mxu1 %v2994_v20 }
  0xf9   : > { %2090 = vmatprep.subr.bf16.mxu1 %v3002_v25  ;;  %v447_v14 = vsub.s32 0, %v3754_v13 }
  0xfb   : > { %2050 = vmatpush1.bf16.msra.mxu0 %v2946_v15  ;;  %v3757_v15 = vld [vmem:[%s442_s24] ss:$2 sm:$0xf] }
  0xfc   : > { %2051 = vmatprep.subr.bf16.mxu0 %v2951_v16  ;;  %2091 = vmatpush1.bf16.msra.mxu1 %v3000_v24  ;;  %v451_v16 = vsub.s32 1, %v3754_v13 }
  0xfd   : > { %2092 = vmatprep.subr.bf16.mxu1 %v3008_v29 }
  0xfe   : > { %v452_v18 = vrot.slane %v3757_v15, %v451_v16 }
  0xff   : > { %2052 = vmatpush1.bf16.msra.mxu0 %v2949_v17  ;;  %v448_v17 = vrot.slane %v3757_v15, %v447_v14 }
 0x100   : > { %2053 = vmatprep.subr.bf16.mxu0 %v2954_v8  ;;  %2093 = vmatpush1.bf16.msra.mxu1 %v3006_v28 }
 0x101   : > { %2094 = vmatprep.subr.bf16.mxu1 %v3014_v33 }
 0x103   : > { %2054 = vmatpush1.bf16.msra.mxu0 %v2952_v19 }
 0x104   : > { %2055 = vmatprep.subr.bf16.mxu0 %v2957_v22  ;;  %2095 = vmatpush1.bf16.msra.mxu1 %v3012_v32  ;;  %v2991_v32 = vld [vmem:[%s3539_s9 + $0xe8] ss:$16 sps:$4 sm:$0xff]  }
 0x105   : > { %2096 = vmatprep.subr.bf16.mxu1 %v3020_v37  ;;  %v3003_v37 = vld [vmem:[%s3539_s9 + $0xa8] ss:$16 sps:$4 sm:$0xff]  }
 0x107   : > { %2056 = vmatpush1.bf16.msra.mxu0 %v2955_v23 }
 0x108   : > { %2057 = vmatprep.subr.bf16.mxu0 %v2960_v26  ;;  %2097 = vmatpush1.bf16.msra.mxu1 %v3018_v36  ;;  %v3005_v36 = vld [vmem:[%s3539_s9 + $0xac] ss:$16 sps:$4 sm:$0xff]  }
 0x109   : > { %2098 = vmatprep.subr.bf16.mxu1 %v3026_v41  ;;  %v3015_v41 = vld [vmem:[%s3539_s9 + $0x68] ss:$16 sps:$4 sm:$0xff]  }
 0x10b   : > { %2058 = vmatpush1.bf16.msra.mxu0 %v2958_v27 }
 0x10c   : > { %2059 = vmatprep.subr.bf16.mxu0 %v2963_v30  ;;  %2099 = vmatpush1.bf16.msra.mxu1 %v3024_v40  ;;  %v3017_v40 = vld [vmem:[%s3539_s9 + $0x6c] ss:$16 sps:$4 sm:$0xff]  }
 0x10d   : > { %2100 = vmatprep.subr.bf16.mxu1 %v3032_v45  ;;  %v3027_v45 = vld [vmem:[%s3539_s9 + $0x28] ss:$16 sps:$4 sm:$0xff]  }
 0x10f   : > { %2060 = vmatpush1.bf16.msra.mxu0 %v2961_v31 }
 0x110   : > { %2061 = vmatprep.subr.bf16.mxu0 %v2966_v34  ;;  %2101 = vmatpush1.bf16.msra.mxu1 %v3030_v44  ;;  %v2999_v34 = vld [vmem:[%s3539_s9 + $0xcc] ss:$16 sps:$4 sm:$0xff]  }
 0x111   : > { %2102 = vmatprep.subr.bf16.mxu1 %v3038_v49  ;;  %v3029_v44 = vld [vmem:[%s3539_s9 + $0x2c] ss:$16 sps:$4 sm:$0xff]   ;;  %v3039_v49 = vld [vmem:[%s3539_s9 + $0x1e8] ss:$16 sps:$4 sm:$0xff]  }
 0x113   : > { %2062 = vmatpush2.bf16.msra.mxu0 %v2964_v35  ;;  %v2997_v35 = vld [vmem:[%s3539_s9 + $0xc8] ss:$16 sps:$4 sm:$0xff]  }
 0x114   : > { %2063 = vmatprep.subr.bf16.mxu0 %v2969_v38  ;;  %2103 = vmatpush2.bf16.msra.mxu1 %v3036_v48  ;;  %v3011_v38 = vld [vmem:[%s3539_s9 + $0x8c] ss:$16 sps:$4 sm:$0xff]  }
 0x115   : > { %2104 = vmatprep.subr.bf16.mxu1 %v3044_v53  ;;  %v3041_v48 = vld [vmem:[%s3539_s9 + $0x1ec] ss:$16 sps:$4 sm:$0xff]   ;;  %v3051_v53 = vld [vmem:[%s3539_s9 + $0x1a8] ss:$16 sps:$4 sm:$0xff]  }
 0x117   : > { %2064 = vmatpush2.bf16.msra.mxu0 %v2967_v39  ;;  %v3009_v39 = vld [vmem:[%s3539_s9 + $0x88] ss:$16 sps:$4 sm:$0xff]  }
 0x118   : > { %2065 = vmatprep.subr.bf16.mxu0 %v2972_v42  ;;  %2105 = vmatpush2.bf16.msra.mxu1 %v3042_v52  ;;  %v3023_v42 = vld [vmem:[%s3539_s9 + $0x4c] ss:$16 sps:$4 sm:$0xff]  }
 0x119   : > { %2106 = vmatprep.subr.bf16.mxu1 %v3050_v57  ;;  %v3053_v52 = vld [vmem:[%s3539_s9 + $0x1ac] ss:$16 sps:$4 sm:$0xff]   ;;  %v3063_v57 = vld [vmem:[%s3539_s9 + $0x168] ss:$16 sps:$4 sm:$0xff]  }
 0x11b   : > { %2066 = vmatpush2.bf16.msra.mxu0 %v2970_v43  ;;  %v3021_v43 = vld [vmem:[%s3539_s9 + $0x48] ss:$16 sps:$4 sm:$0xff]  }
 0x11c   : > { %2067 = vmatprep.subr.bf16.mxu0 %v2975_v46  ;;  %2107 = vmatpush2.bf16.msra.mxu1 %v3048_v56  ;;  %v3035_v46 = vld [vmem:[%s3539_s9 + $0xc] ss:$16 sps:$4 sm:$0xff]  }
 0x11d   : > { %2108 = vmatprep.subr.bf16.mxu1 %v3056_v61  ;;  %v3065_v56 = vld [vmem:[%s3539_s9 + $0x16c] ss:$16 sps:$4 sm:$0xff]   ;;  %v3069_v61 = vld [vmem:[%s3539_s9 + $0x148] ss:$16 sps:$4 sm:$0xff]  }
 0x11f   : > { %2068 = vmatpush2.bf16.msra.mxu0 %v2973_v47  ;;  %v3033_v47 = vld [vmem:[%s3539_s9 + $0x8] ss:$16 sps:$4 sm:$0xff]  }
 0x120   : > { %2069 = vmatprep.subr.bf16.mxu0 %v2978_v50  ;;  %2109 = vmatpush2.bf16.msra.mxu1 %v3054_v60  ;;  %v3047_v50 = vld [vmem:[%s3539_s9 + $0x1cc] ss:$16 sps:$4 sm:$0xff]   ;;  %v459_v60 = vsub.s32 3, %v3754_v13 }
 0x121   : > { %2110 = vmatprep.subr.bf16.mxu1 %v3062_v1 }
 0x123   : > { %2070 = vmatpush2.bf16.msra.mxu0 %v2976_v51  ;;  %v3045_v51 = vld [vmem:[%s3539_s9 + $0x1c8] ss:$16 sps:$4 sm:$0xff]  }
 0x124   : > { %2071 = vmatprep.subr.bf16.mxu0 %v2981_v54  ;;  %2111 = vmatpush2.bf16.msra.mxu1 %v3060_v0  ;;  %v3059_v54 = vld [vmem:[%s3539_s9 + $0x18c] ss:$16 sps:$4 sm:$0xff]   ;;  %v460_v0 = vrot.slane %v3757_v15, %v459_v60 }
 0x125   : > { %2112 = vmatprep.subr.bf16.mxu1 %v3068_v4  ;;  %v3075_v4 = vld [vmem:[%s3539_s9 + $0x128] ss:$16 sps:$4 sm:$0xff]  }
 0x127   : > { %2072 = vmatpush2.bf16.msra.mxu0 %v2979_v55  ;;  %v3057_v55 = vld [vmem:[%s3539_s9 + $0x188] ss:$16 sps:$4 sm:$0xff]  }
 0x128   : > { %2073 = vmatprep.subr.bf16.mxu0 %v2984_v58  ;;  %2113 = vmatpush2.bf16.msra.mxu1 %v3066_v3  ;;  %v455_v58 = vsub.s32 2, %v3754_v13 }
 0x129   : > { %2114 = vmatprep.subr.bf16.mxu1 %v3074_v5 }
 0x12b   : > { %2074 = vmatpush2.bf16.msra.mxu0 %v2982_v59  ;;  %v3071_v59 = vld [vmem:[%s3539_s9 + $0x14c] ss:$16 sps:$4 sm:$0xff]  }
 0x12c   : > { %2075 = vmatprep.subr.bf16.mxu0 %v2987_v62  ;;  %2115 = vmatpush2.bf16.msra.mxu1 %v3072_v6  ;;  %v456_v62 = vrot.slane %v3757_v15, %v455_v58 }
 0x12d   : > { %2116 = vmatprep.subr.bf16.mxu1 %v3080_v7  ;;  %v3083_v7 = vld [vmem:[%s3539_s9 + $0x10c] ss:$16 sps:$4 sm:$0xff]  }
 0x12f   : > { %2076 = vmatpush2.bf16.msra.mxu0 %v2985_v63  ;;  %v3077_v63 = vld [vmem:[%s3539_s9 + $0x12c] ss:$16 sps:$4 sm:$0xff]  }
 0x130   : > { %2127 = vmatprep.subr.bf16.mxu0 %v2993_v2  ;;  %2117 = vmatpush2.bf16.msra.mxu1 %v3078_v10 }
 0x131   : > { %2168 = vmatprep.subr.bf16.mxu1 %v3086_v11 }
 0x172   : > { %v1139_v8 = vpop.f32.mrf.mxu0 }
 0x173   : > { %v1180_v9 = vpop.f32.mrf.mxu1  ;;  %v1140_v19 = vadd.f32 %v1139_v8, %v448_v17  ;;  %v3081_v8 = vld [vmem:[%s3539_s9 + $0x108] ss:$16 sps:$4 sm:$0xff]  }
 0x174   : > { %v1141_v20 = vpop.f32.mrf.mxu0 }
 0x175   : > { %v1182_v21 = vpop.f32.mrf.mxu1  ;;  %v1181_v22 = vadd.f32 %v1180_v9, %v1140_v19  ;;  %v1142_v23 = vadd.f32 %v1141_v20, %v452_v18 }
 0x176   : > { %v1143_v24 = vpop.f32.mrf.mxu0 }
 0x177   : > { %v1184_v25 = vpop.f32.mrf.mxu1  ;;  %v1183_v26 = vadd.f32 %v1182_v21, %v1142_v23  ;;  %v1269_v27 = vmax.f32 %v1181_v22, 0.0  ;;  %v3084_v22 = vld [vmem:[%s3539_s9 + $0x2e8] ss:$16 sps:$4 sm:$0xff]   ;;  %v3089_v24 = vld [vmem:[%s3539_s9 + $0x2cc] ss:$16 sps:$4 sm:$0xff]  }
 0x178   : > { %v1144_v28 = vpop.f32.mrf.mxu0  ;;  %v3087_v25 = vld [vmem:[%s3539_s9 + $0x2c8] ss:$16 sps:$4 sm:$0xff]  }
 0x179   : > { %v1185_v29 = vpop.f32.mrf.mxu1  ;;  %v1270_v30 = vmax.f32 %v1183_v26, 0.0  ;;  %v3767_v33 = vpack.c.bf16 %v1269_v27, %v1269_v27  ;;  %v3092_v26 = vld [vmem:[%s3539_s9 + $0x2ac] ss:$16 sps:$4 sm:$0xff]   ;;  %v3090_v27 = vld [vmem:[%s3539_s9 + $0x2a8] ss:$16 sps:$4 sm:$0xff]  }
 0x17a   : > { %v3095_v28 = vld [vmem:[%s3539_s9 + $0x28c] ss:$16 sps:$4 sm:$0xff]   ;;  %v3093_v29 = vld [vmem:[%s3539_s9 + $0x288] ss:$16 sps:$4 sm:$0xff]  }
 0x17b   : > { %v1274_v31 = vpack.c.bf16 %v1270_v30, %v1270_v30  ;;  %v3098_v30 = vld [vmem:[%s3539_s9 + $0x26c] ss:$16 sps:$4 sm:$0xff]  }
 0x17d   : > { %2077 = vmatprep.mubr.bf16.mxu0 %v1274_v31 }
 0x17e   : > { %2078 = vmatmul.mubr.bf16.vlgmr.msra.gmra.mxu0 %v3767_v33 }
 0x17f   : > { %2128 = vmatpush1.bf16.msra.mxu0 %v2991_v32  ;;  %2159 = vmatprep.mubr.bf16.mxu0 %v1274_v31  ;;  %v3096_v31 = vld [vmem:[%s3539_s9 + $0x268] ss:$16 sps:$4 sm:$0xff]   ;;  %v3101_v32 = vld [vmem:[%s3539_s9 + $0x24c] ss:$16 sps:$4 sm:$0xff]  }
 0x180   : > { %2129 = vmatprep.subr.bf16.mxu0 %v2999_v34  ;;  %v3104_v34 = vld [vmem:[%s3539_s9 + $0x22c] ss:$16 sps:$4 sm:$0xff]  }
 0x183   : > { %2130 = vmatpush1.bf16.msra.mxu0 %v2997_v35  ;;  %v3102_v35 = vld [vmem:[%s3539_s9 + $0x228] ss:$16 sps:$4 sm:$0xff]  }
 0x184   : > { %2131 = vmatprep.subr.bf16.mxu0 %v3005_v36  ;;  %v3107_v36 = vld [vmem:[%s3539_s9 + $0x20c] ss:$16 sps:$4 sm:$0xff]  }
 0x187   : > { %2132 = vmatpush1.bf16.msra.mxu0 %v3003_v37  ;;  %v3105_v37 = vld [vmem:[%s3539_s9 + $0x208] ss:$16 sps:$4 sm:$0xff]  }
 0x188   : > { %2133 = vmatprep.subr.bf16.mxu0 %v3011_v38  ;;  %v3110_v38 = vld [vmem:[%s3539_s9 + $0x3ec] ss:$16 sps:$4 sm:$0xff]  }
 0x18b   : > { %2134 = vmatpush1.bf16.msra.mxu0 %v3009_v39  ;;  %v3108_v39 = vld [vmem:[%s3539_s9 + $0x3e8] ss:$16 sps:$4 sm:$0xff]  }
 0x18c   : > { %2135 = vmatprep.subr.bf16.mxu0 %v3017_v40  ;;  %v3113_v40 = vld [vmem:[%s3539_s9 + $0x3cc] ss:$16 sps:$4 sm:$0xff]  }
 0x18f   : > { %2136 = vmatpush1.bf16.msra.mxu0 %v3015_v41  ;;  %v3111_v41 = vld [vmem:[%s3539_s9 + $0x3c8] ss:$16 sps:$4 sm:$0xff]  }
 0x190   : > { %2137 = vmatprep.subr.bf16.mxu0 %v3023_v42  ;;  %v3116_v42 = vld [vmem:[%s3539_s9 + $0x3ac] ss:$16 sps:$4 sm:$0xff]  }
 0x193   : > { %2138 = vmatpush1.bf16.msra.mxu0 %v3021_v43  ;;  %v3114_v43 = vld [vmem:[%s3539_s9 + $0x3a8] ss:$16 sps:$4 sm:$0xff]  }
 0x194   : > { %2139 = vmatprep.subr.bf16.mxu0 %v3029_v44  ;;  %v3119_v44 = vld [vmem:[%s3539_s9 + $0x38c] ss:$16 sps:$4 sm:$0xff]  }
 0x197   : > { %2140 = vmatpush1.bf16.msra.mxu0 %v3027_v45  ;;  %v3117_v45 = vld [vmem:[%s3539_s9 + $0x388] ss:$16 sps:$4 sm:$0xff]  }
 0x198   : > { %2141 = vmatprep.subr.bf16.mxu0 %v3035_v46  ;;  %v3122_v46 = vld [vmem:[%s3539_s9 + $0x36c] ss:$16 sps:$4 sm:$0xff]  }
 0x19b   : > { %2142 = vmatpush1.bf16.msra.mxu0 %v3033_v47  ;;  %v3120_v47 = vld [vmem:[%s3539_s9 + $0x368] ss:$16 sps:$4 sm:$0xff]  }
 0x19c   : > { %2143 = vmatprep.subr.bf16.mxu0 %v3041_v48  ;;  %v3125_v48 = vld [vmem:[%s3539_s9 + $0x34c] ss:$16 sps:$4 sm:$0xff]  }
 0x19f   : > { %2144 = vmatpush2.bf16.msra.mxu0 %v3039_v49  ;;  %v3123_v49 = vld [vmem:[%s3539_s9 + $0x348] ss:$16 sps:$4 sm:$0xff]  }
 0x1a0   : > { %2145 = vmatprep.subr.bf16.mxu0 %v3047_v50  ;;  %v3128_v50 = vld [vmem:[%s3539_s9 + $0x32c] ss:$16 sps:$4 sm:$0xff]  }
 0x1a3   : > { %2146 = vmatpush2.bf16.msra.mxu0 %v3045_v51  ;;  %v3126_v51 = vld [vmem:[%s3539_s9 + $0x328] ss:$16 sps:$4 sm:$0xff]  }
 0x1a4   : > { %2147 = vmatprep.subr.bf16.mxu0 %v3053_v52  ;;  %v3131_v52 = vld [vmem:[%s3539_s9 + $0x30c] ss:$16 sps:$4 sm:$0xff]  }
 0x1a7   : > { %2148 = vmatpush2.bf16.msra.mxu0 %v3051_v53  ;;  %v3129_v53 = vld [vmem:[%s3539_s9 + $0x308] ss:$16 sps:$4 sm:$0xff]  }
 0x1a8   : > { %2149 = vmatprep.subr.bf16.mxu0 %v3059_v54 }
 0x1ab   : > { %2150 = vmatpush2.bf16.msra.mxu0 %v3057_v55 }
 0x1ac   : > { %2151 = vmatprep.subr.bf16.mxu0 %v3065_v56 }
 0x1af   : > { %2152 = vmatpush2.bf16.msra.mxu0 %v3063_v57 }
 0x1b0   : > { %2153 = vmatprep.subr.bf16.mxu0 %v3071_v59 }
 0x1b2   : > { %v1221_v1 = vpop.f32.mrf.mxu0 }
 0x1b3   : > { %v1262_v2 = vpop.f32.mrf.mxu1  ;;  %v1222_v3 = vadd.f32 %v1221_v1, %v456_v62  ;;  %2154 = vmatpush2.bf16.msra.mxu0 %v3069_v61 }
 0x1b4   : > { %v1223_v5 = vpop.f32.mrf.mxu0  ;;  %2155 = vmatprep.subr.bf16.mxu0 %v3077_v63 }
 0x1b5   : > { %v1264_v6 = vpop.f32.mrf.mxu1  ;;  %v1263_v10 = vadd.f32 %v1262_v2, %v1222_v3  ;;  %v1224_v11 = vadd.f32 %v1223_v5, %v460_v0 }
 0x1b6   : > { %v1225_v12 = vpop.f32.mrf.mxu0 }
 0x1b7   : > { %v1266_v17 = vpop.f32.mrf.mxu1  ;;  %v1265_v18 = vadd.f32 %v1264_v6, %v1224_v11  ;;  %2156 = vmatpush2.bf16.msra.mxu0 %v3075_v4  ;;  %v1271_v15 = vmax.f32 %v1263_v10, 0.0 }
 0x1b8   : > { %v1226_v9 = vpop.f32.mrf.mxu0  ;;  %2157 = vmatprep.subr.bf16.mxu0 %v3083_v7 }
 0x1b9   : > { %v1267_v19 = vpop.f32.mrf.mxu1  ;;  %v1272_v20 = vmax.f32 %v1265_v18, 0.0  ;;  %v3809_v23 = vpack.c.bf16 %v1271_v15, %v1271_v15 }
 0x1bb   : > { %v1276_v21 = vpack.c.bf16 %v1272_v20, %v1272_v20  ;;  %2158 = vmatpush2.bf16.msra.mxu0 %v3081_v8 }
 0x1bd   : > { %2118 = vmatprep.mubr.bf16.mxu1 %v1276_v21 }
 0x1be   : > { %2160 = vmatmul.mubr.bf16.vlgmr.msra.gmra.mxu0 %v3767_v33  ;;  %2119 = vmatmul.mubr.bf16.vlgmr.msra.gmra.mxu1 %v3809_v23  ;;  %v3099_v33 = vld [vmem:[%s3539_s9 + $0x248] ss:$16 sps:$4 sm:$0xff]  }
 0x1bf   : > { %2169 = vmatpush1.bf16.msra.mxu1 %v3084_v22  ;;  %2200 = vmatprep.mubr.bf16.mxu1 %v1276_v21 }
 0x1c0   : > { %2170 = vmatprep.subr.bf16.mxu1 %v3089_v24 }
 0x1c3   : > { %2171 = vmatpush1.bf16.msra.mxu1 %v3087_v25 }
 0x1c4   : > { %2172 = vmatprep.subr.bf16.mxu1 %v3092_v26 }
 0x1c7   : > { %2173 = vmatpush1.bf16.msra.mxu1 %v3090_v27 }
 0x1c8   : > { %2174 = vmatprep.subr.bf16.mxu1 %v3095_v28 }
 0x1cb   : > { %2175 = vmatpush1.bf16.msra.mxu1 %v3093_v29 }
 0x1cc   : > { %2176 = vmatprep.subr.bf16.mxu1 %v3098_v30 }
 0x1cf   : > { %2177 = vmatpush1.bf16.msra.mxu1 %v3096_v31 }
 0x1d0   : > { %2178 = vmatprep.subr.bf16.mxu1 %v3101_v32 }
 0x1d3   : > { %2179 = vmatpush1.bf16.msra.mxu1 %v3099_v33 }
 0x1d4   : > { %2180 = vmatprep.subr.bf16.mxu1 %v3104_v34 }
 0x1d7   : > { %2181 = vmatpush1.bf16.msra.mxu1 %v3102_v35 }
 0x1d8   : > { %2182 = vmatprep.subr.bf16.mxu1 %v3107_v36 }
 0x1db   : > { %2183 = vmatpush1.bf16.msra.mxu1 %v3105_v37 }
 0x1dc   : > { %2184 = vmatprep.subr.bf16.mxu1 %v3110_v38 }
 0x1df   : > { %2185 = vmatpush2.bf16.msra.mxu1 %v3108_v39 }
 0x1e0   : > { %2186 = vmatprep.subr.bf16.mxu1 %v3113_v40 }
 0x1e3   : > { %2187 = vmatpush2.bf16.msra.mxu1 %v3111_v41 }
 0x1e4   : > { %2188 = vmatprep.subr.bf16.mxu1 %v3116_v42 }
 0x1e7   : > { %2189 = vmatpush2.bf16.msra.mxu1 %v3114_v43 }
 0x1e8   : > { %2190 = vmatprep.subr.bf16.mxu1 %v3119_v44 }
 0x1eb   : > { %2191 = vmatpush2.bf16.msra.mxu1 %v3117_v45 }
 0x1ec   : > { %2192 = vmatprep.subr.bf16.mxu1 %v3122_v46 }
 0x1ef   : > { %2193 = vmatpush2.bf16.msra.mxu1 %v3120_v47 }
 0x1f0   : > { %2194 = vmatprep.subr.bf16.mxu1 %v3125_v48 }
 0x1f3   : > { %2195 = vmatpush2.bf16.msra.mxu1 %v3123_v49 }
 0x1f4   : > { %2196 = vmatprep.subr.bf16.mxu1 %v3128_v50 }
 0x1f7   : > { %2197 = vmatpush2.bf16.msra.mxu1 %v3126_v51 }
 0x1f8   : > { %2198 = vmatprep.subr.bf16.mxu1 %v3131_v52 }
 0x1fb   : > { %2199 = vmatpush2.bf16.msra.mxu1 %v3129_v53 }
 0x1fe   : > { %2201 = vmatmul.mubr.bf16.vlgmr.msra.gmra.mxu1 %v3809_v23 }
 0x23e   : > { %v2079_v54 = vpop.f32.mrf.mxu0 }
 0x240   : > { %v2081_v55 = vpop.f32.mrf.mxu0 }
 0x242   : > { %v2083_v56 = vpop.f32.mrf.mxu0 }
 0x244   : > { %v2084_v57 = vpop.f32.mrf.mxu0 }
 0x27e   : > { %v2161_v59 = vpop.f32.mrf.mxu0  ;;  %v2120_v61 = vpop.f32.mrf.mxu1 }
 0x27f   : > { %v2121_v62 = vadd.f32 %v2120_v61, %v2079_v54 }
 0x280   : > { %v2163_v63 = vpop.f32.mrf.mxu0  ;;  %v2122_v0 = vpop.f32.mrf.mxu1 }
 0x281   : > { %v2123_v1 = vadd.f32 %v2122_v0, %v2081_v55 }
 0x282   : > { %v2165_v2 = vpop.f32.mrf.mxu0  ;;  %v2124_v3 = vpop.f32.mrf.mxu1 }
 0x284   : > { %v2166_v4 = vpop.f32.mrf.mxu0  ;;  %v2125_v5 = vpop.f32.mrf.mxu1 }
 0x2be   : > { %v2202_v6 = vpop.f32.mrf.mxu1 }
 0x2bf   : > { %v2203_v7 = vadd.f32 %v2202_v6, %v2161_v59 }
 0x2c0   : > { %v2204_v10 = vpop.f32.mrf.mxu1  ;;  %2212 = sbr.rel (%p3906_p4) target bundleno = 711 (0x2c7), region = 60 }
 0x2c1   : > { %v2205_v11 = vadd.f32 %v2204_v10, %v2163_v63 }
 0x2c2   : > { %v2206_v12 = vpop.f32.mrf.mxu1 }
 0x2c4   : > { %v2207_v17 = vpop.f32.mrf.mxu1 }
 0x2c5   : > { %2213 = vst [vmem:[#allocation10] sm:$0xff] %v2121_v62  ;;  %2214 = vst [vmem:[#allocation10 + $0x8] sm:$0xff] %v2123_v1 }
 0x2c6   : > { %2215 = vst [vmem:[#allocation10 + $0x10] sm:$0xff] %v2203_v7  ;;  %2216 = vst [vmem:[#allocation10 + $0x18] sm:$0xff] %v2205_v11 }
 0x2c7 PF: > { %p2663_p12 = scmp.le.s32.totalorder %s3373_s22, 0 }
 0x2c9   : > { %2220 = sbr.rel (%p2663_p12) target bundleno = 723 (0x2d3), region = 64 }
 0x2ce   : > { %v2221_v18 = vld [vmem:[#allocation10] sm:$0xff]  ;;  %v2222_v8 = vld [vmem:[#allocation10 + $0x8] sm:$0xff]  ;;  %v2223_v15 = vld [vmem:[#allocation10 + $0x10] sm:$0xff] }
 0x2cf   : > { %v2225_v9 = vadd.f32 %v2221_v18, %v2121_v62  ;;  %v2226_v19 = vadd.f32 %v2222_v8, %v2123_v1  ;;  %v2227_v20 = vadd.f32 %v2223_v15, %v2203_v7  ;;  %v2224_v21 = vld [vmem:[#allocation10 + $0x18] sm:$0xff] }
 0x2d0   : > { %v2228_v22 = vadd.f32 %v2224_v21, %v2205_v11 }
 0x2d1   : > { %2229 = vst [vmem:[#allocation10] sm:$0xff] %v2225_v9  ;;  %2230 = vst [vmem:[#allocation10 + $0x8] sm:$0xff] %v2226_v19 }
 0x2d2   : > { %2231 = vst [vmem:[#allocation10 + $0x10] sm:$0xff] %v2227_v20  ;;  %2232 = vst [vmem:[#allocation10 + $0x18] sm:$0xff] %v2228_v22 }
 0x2d3 PF: > { %p2664_p2 = scmp.ne.s32.totalorder %s3373_s22, 1 }
 0x2d5   : > { %2236 = sbr.rel (%p2664_p2) target bundleno = 740 (0x2e4), region = 68 }
 0x2da   : > { %v2237_v23 = vld [vmem:[#allocation10] sm:$0xff]  ;;  %v2241_v24 = vld [vmem:[%s3888_s4] sm:$0xf]  ;;  %v2238_v25 = vld [vmem:[#allocation10 + $0x8] sm:$0xff] }
 0x2db   : > { %v2246_v26 = vrot.slane %v2241_v24, %v447_v14  ;;  %v2250_v27 = vrot.slane %v2241_v24, %v451_v16  ;;  %v2239_v28 = vld [vmem:[#allocation10 + $0x10] sm:$0xff]  ;;  %v2254_v29 = vrot.slane %v2241_v24, %v455_v58  ;;  %v2240_v30 = vld [vmem:[#allocation10 + $0x18] sm:$0xff]  ;;  %v2258_v31 = vrot.slane %v2241_v24, %v459_v60 }
 0x2dd   : > { %v2263_v32 = vadd.f32 %v2246_v26, %v2237_v23  ;;  %v2264_v33 = vadd.f32 %v2250_v27, %v2238_v25  ;;  %v2265_v34 = vadd.f32 %v2254_v29, %v2239_v28  ;;  %v2266_v35 = vadd.f32 %v2258_v31, %v2240_v30 }
 0x2df   : > { %vm2267_vm0 = vcmp.ge.f32.partialorder %v2263_v32, 0.0  ;;  %v2271_v36 = vmul.f32 0.2, %v2263_v32  ;;  %vm2268_vm1 = vcmp.ge.f32.partialorder %v2264_v33, 0.0  ;;  %v2272_v37 = vmul.f32 0.2, %v2264_v33 }
 0x2e0   : > { %vm2269_vm2 = vcmp.ge.f32.partialorder %v2265_v34, 0.0  ;;  %v2273_v14 = vmul.f32 0.2, %v2265_v34  ;;  %vm2270_vm3 = vcmp.ge.f32.partialorder %v2266_v35, 0.0  ;;  %v2274_v16 = vmul.f32 0.2, %v2266_v35 }
 0x2e1   : > { %v2275_v38 = vsel %vm2267_vm0, %v2263_v32, %v2271_v36  ;;  %v2276_v39 = vsel %vm2268_vm1, %v2264_v33, %v2272_v37 }
 0x2e2   : > { %2279 = vst [vmem:[#allocation10] sm:$0xff] %v2275_v38  ;;  %2280 = vst [vmem:[#allocation10 + $0x8] sm:$0xff] %v2276_v39  ;;  %v2277_v58 = vsel %vm2269_vm2, %v2265_v34, %v2273_v14  ;;  %v2278_v40 = vsel %vm2270_vm3, %v2266_v35, %v2274_v16 }
 0x2e3   : > { %2281 = vst [vmem:[#allocation10 + $0x10] sm:$0xff] %v2277_v58  ;;  %2282 = vst [vmem:[#allocation10 + $0x18] sm:$0xff] %v2278_v40 }
 0x2e4 PF: > { %p2708_p3 = scmp.eq.s32.totalorder %s3373_s22, 1  ;;  %s3323_s6 = smov [#allocation10]  }
 0x2e5   : > { %s2290_s8 = sshll.u32 %s3323_s6, 4  ;;  %s2291_s8 = int_to_ptr.vmem [resolvable:$true] %s2290_s8 }
 0x2e6   : > { %s3240_s12 = scalar_lea.vmem %s2291_s8, 512  ;;  %p3247_p0 = scmp.lt.s32.totalorder %s2291_s8, %s2291_s8 }
 0x2e7   : > { %p3241_p5 = scmp.ne.s32.totalorder %s2291_s8, %s3240_s12  ;;  %p3248_p9 = scmp.lt.s32.totalorder %s3240_s12, %s3240_s12 }
 0x2e9   : > { %p3242_p10 = pnand %p3241_p5, %p2708_p3  ;;  %p3249_p1 = por %p3248_p9, %p3247_p0 }
 0x2eb   : > { %p3243_p13 = pneg %p3242_p10 }
 0x2ed   : > { %p3250_p6 = pnand %p3249_p1, %p3243_p13 }
 0x2ef   : > { %3253 = shalt.err (!%p3250_p6)
}
 0x2f0   : > { %2686 = dma.vmem_to_hbm [thread:$0]  (%p2708_p3), %s2291_s8, 512, %s3889_s5, [#allocation4]  }
 0x2f1   : > { %3297 = dma.done.wait (%p2708_p3), [#allocation4], 512  }
 0x2f2   : > { %3299 = vsyncadd (%p2708_p3), [#allocation4], 4294966784 }
 0x2f3 PF: > { %p20_p8 = scmp.ge.s32.totalorder %s3376_s23, 4   ;;  %s3907_s18 = smov %s3306_s19 }
 0x2f4   : > { %s3908_s19 = smov %s3310_s20  ;;  %s3909_s20 = smov %s3386_s26 }
 0x2f5   : > { %s3910_s21 = smov %s3376_s23  ;;  %22 = sbr.rel (!%p20_p8) target bundleno = 7 (0x7), region = 112 }
 0x2fa   :  { %2303 = vsyncpa [#allocation3], 1 }
 0x2fb   :  { %2305 = vsyncpa [#allocation3 + $0x1], 1 }
 0x2fc   :  { %2306 = vsyncpa [#allocation6], 1 }
 0x2fd   :  { %2308 = vsyncpa [#allocation6 + $0x1], 1 }
 0x2fe   :  { %2309 = vsyncpa [#allocation9], 1 }
 0x2ff   :  { %2311 = vsyncpa [#allocation9 + $0x1], 1 }
 0x300   :  { %2312 = vsyncpa [#allocation4], 1 }
 0x301   :  { %2314 = vsyncpa [#allocation4 + $0x1], 1 }

</bundles_post_ra>
